<compile_context>
chip_gen: v6e
topology: v6e:2x2x1
jax: 0.10.0
libtpu: 0.0.40
codegen_flags: <defaults>
</compile_context>

<pallas_src>
import jax
import jax.numpy as jnp
import numpy as np
from jax.experimental import pallas as pl
from jax.experimental.pallas import tpu as pltpu


# ---------------------------------------------------------------------------
# Per-generation VMEM budgeting
# ---------------------------------------------------------------------------
def _phys_vmem_bytes():
    try:
        return int(pltpu.get_tpu_info().vmem_capacity_bytes)
    except Exception:
        return 64 * 1024 * 1024        # conservative (v7x-sized) fallback


_PHYS_VMEM = _phys_vmem_bytes()
# Scoped limit: above the 16/32 MiB defaults, below physical capacity
# (128 MiB on v5e/v6e -> 96 MiB; 64 MiB on v7x -> 48 MiB).
_VMEM_LIMIT = min(int(0.75 * _PHYS_VMEM), 100 * 1024 * 1024)
# Per-grid-step block budget: ~30% of physical VMEM, 28 MiB cap
# (v5e/v6e: 28 MiB, v7x: ~19 MiB), paired with conservative step_bytes.
_BLOCK_BUDGET = min(int(0.30 * _PHYS_VMEM), 28 * 1024 * 1024)


def _pad2d_bytes(sublanes, lanes, itemsize=4):
    """VMEM footprint of one 2-D tile after (8, 128) layout padding."""
    return (-(-sublanes // 8) * 8) * (-(-lanes // 128) * 128) * itemsize


def _row_tile_candidates(ho):
    """Row-tile sizes: multiples of 8 dividing Ho, plus Ho itself (keeps the
    flattened out-block's sublane dim (8,128)-legal)."""
    cands = [d for d in range(8, ho, 8) if ho % d == 0]
    cands.append(ho)
    return sorted(set(cands))


def _pick_row_tile(ho, step_bytes_fn):
    best = None
    for tr in _row_tile_candidates(ho):
        if step_bytes_fn(tr) <= _BLOCK_BUDGET:
            best = tr
    return best if best is not None else _row_tile_candidates(ho)[0]


def _const_spec(shape, index_map, single_buffer):
    """BlockSpec for a grid-invariant operand; single-buffered when supported."""
    if single_buffer:
        try:
            return pl.BlockSpec(shape, index_map, pipeline_mode=pl.Buffered(1))
        except Exception:
            pass
    return pl.BlockSpec(shape, index_map)


# ---------------------------------------------------------------------------
# Kernels
# ---------------------------------------------------------------------------
def _lane_flatten(x3):
    """(rows, w, c) -> (rows, w*c) using only static slices + one lane-axis
    concatenate, producing a lane-dense slab for the output store."""
    rows, w, c = x3.shape
    if w == 1:
        return x3[:, 0, :]
    # TODO(synk): for very large w, flatten in groups of ceil(128/c) columns
    # if this w-way concatenate ever dominates the profile.
    return jnp.concatenate([x3[:, i, :] for i in range(w)], axis=-1)


def _conv_down_kernel(xa_ref, xb_ref, w_ref, b_ref, o_ref):
    """3x3 stride-2 conv on one batch element x one tile of output rows.

    Paired layout (free wrapper reshape): plane p holds padded rows 2p/2p+1;
    sublane s < Wp2h = column-pair s of the even row, sublane Wp2h + s = the
    odd row; the lane axis holds the (even col, odd col) channel pair.

    xa_ref: (1, tr, S, 2*Ci)  planes r*tr .. r*tr+tr-1    (S = 2*Wp2h)
    xb_ref: (1, 1,  S, 2*Ci)  plane (r+1)*tr (kh=2 of the tile's last row)
    w_ref : (9*Ci, Co)        folded-K weights (2*Ci < 128)         -- or --
            (6, 2*Ci, Co)     j = 2*kh + shift (shift 1: odd half zeroed)
    b_ref : (1, Co)
    o_ref : (1, tr, Wo*Co) lane-dense  |  (1, tr, Wo, Co)
    """
    tr, s_len, ci2 = xa_ref.shape[1], xa_ref.shape[2], xa_ref.shape[3]
    ci = ci2 // 2
    wp2h = s_len // 2
    wo = wp2h - 1
    m = tr * wo
    co = w_ref.shape[-1]

    lo = xa_ref[0]                                     # (tr, S, 2Ci): kh in {0,1}
    # kh=2 only reads the even-row half (sublanes [0, Wp2h)) of the *next*
    # plane: build a half-size slab instead of re-materialising the tile.
    if tr == 1:
        hi = xb_ref[0][:, 0:wp2h, :]
    else:
        hi = jnp.concatenate([lo[1:, 0:wp2h, :], xb_ref[0][:, 0:wp2h, :]],
                             axis=0)                   # (tr, Wp2h, 2Ci)

    def tap(planes, start):
        # contiguous sublane window [start, start+Wo): no strided gathers.
        return planes[:, start:start + wo, :].reshape(m, ci2)

    t00, t01 = tap(lo, 0), tap(lo, 1)                  # kh = 0
    t10, t11 = tap(lo, wp2h), tap(lo, wp2h + 1)        # kh = 1
    t20, t21 = tap(hi, 0), tap(hi, 1)                  # kh = 2

    bias = b_ref[...].astype(jnp.float32)              # (1, Co)

    if w_ref.ndim == 2:
        # Folded K: single matmul with K = 9*Ci. kw=2 taps keep only their
        # even-column half, matching w = OIHW->(kh,kw,Ci,Co)->(9*Ci, Co).
        x_cat = jnp.concatenate(
            [t00, t01[:, 0:ci], t10, t11[:, 0:ci], t20, t21[:, 0:ci]],
            axis=-1)                                   # (M, 9*Ci)
        acc = jnp.dot(x_cat, w_ref[...],
                      preferred_element_type=jnp.float32) + bias
    else:
        # Wide channels: six accumulated MXU dots; pure linear chain seeded
        # with the bias (no interleaved VPU work between dots).
        acc = jnp.broadcast_to(bias, (m, co))
        for j, t in enumerate((t00, t01, t10, t11, t20, t21)):
            acc = acc + jnp.dot(t, w_ref[j],
                                preferred_element_type=jnp.float32)

    if o_ref.ndim == 3:                                # lane-dense slab
        dense = _lane_flatten(acc.reshape(tr, wo, co))
        o_ref[...] = dense[None].astype(o_ref.dtype)
    else:
        o_ref[...] = acc.reshape(1, tr, wo, co).astype(o_ref.dtype)


def _avg_pool_kernel(x_ref, o_ref):
    """2x2 stride-2 average pool on one batch element x one tile of rows.

    x_ref: (1, tr, 2*Wo, 2*C)  paired layout (see conv kernel docstring)
    o_ref: (1, tr, Wo*C) lane-dense  |  (1, tr, Wo, C)
    """
    tr, s_len, c2 = x_ref.shape[1], x_ref.shape[2], x_ref.shape[3]
    wo, c = s_len // 2, c2 // 2
    # f32 inputs pool in f32; bf16 inputs stay bf16 (native VPU on v6e/v7x;
    # Mosaic legalizes it internally on v5e).
    cdt = jnp.float32 if x_ref.dtype == jnp.float32 else x_ref.dtype
    xv = x_ref[0].astype(cdt)                          # (tr, 2*Wo, 2*C)
    rows = xv[:, 0:wo, :] + xv[:, wo:s_len, :]         # even + odd image rows
    pooled = (rows[:, :, 0:c] + rows[:, :, c:c2]) * jnp.asarray(0.25, cdt)
    if o_ref.ndim == 3:
        o_ref[...] = _lane_flatten(pooled)[None].astype(o_ref.dtype)
    else:
        o_ref[...] = pooled[None].astype(o_ref.dtype)


# ---------------------------------------------------------------------------
# Wrapper
# ---------------------------------------------------------------------------
def downsample(x, with_conv, weight_oihw=None, bias=None, *, data_format="NCHW"):
    """Matches Downsample.forward. x: (N, C, H, W) float for NCHW (default)."""
    if data_format == "NCHW":
        x = jnp.transpose(x, (0, 2, 3, 1))             # NCHW -> NHWC
    n, h, w, ci = x.shape
    ho, wo = h // 2, w // 2
    isz = jnp.dtype(x.dtype).itemsize

    if with_conv:
        co = weight_oihw.shape[0]
        fold = (2 * ci) < 128                          # fold taps into MXU K
        # Pad so every tap is in bounds and both padded extents are even; all
        # padded values are zero, exactly like F.pad(x, (0, 1, 0, 1)).
        xp = jnp.pad(x, ((0, 0), (0, 2 * ho + 2 - h), (0, 2 * wo + 2 - w), (0, 0)))
        wp2h = wo + 1
        s_len = 2 * wp2h
        # Free reshape: plane = 2 padded rows, W columns paired onto lanes.
        xp = xp.reshape(n, ho + 1, s_len, 2 * ci)

        # TODO(synk): with bf16 activations the weights are rounded to bf16
        # before the MXU (accumulation stays f32) - slightly different from
        # torch's f32 conv.
        wt = jnp.transpose(weight_oihw, (2, 3, 1, 0)).astype(x.dtype)  # (3,3,Ci,Co)
        if fold:
            w_arg = wt.reshape(9 * ci, co)             # folded K, no zero filler
            w_spec_shape = (9 * ci, co)
            w_idx = lambda b, r: (0, 0)
        else:
            zblk = jnp.zeros((ci, co), x.dtype)
            w_arg = jnp.stack(
                [jnp.concatenate([wt[kh, 0], wt[kh, 1]], axis=0) if sh == 0
                 else jnp.concatenate([wt[kh, 2], zblk], axis=0)
                 for kh in range(3) for sh in (0, 1)], axis=0)         # (6,2Ci,Co)
            w_spec_shape = (6, 2 * ci, co)
            w_idx = lambda b, r: (0, 0, 0)
        b_row = bias.reshape(1, co).astype(x.dtype)

        flatten_out = (co % 128) != 0                  # lane-dense store

        def step_bytes(tr):
            m = tr * wo
            in_a = tr * _pad2d_bytes(s_len, 2 * ci, isz)
            in_b = _pad2d_bytes(s_len, 2 * ci, isz)
            out_b = (_pad2d_bytes(tr, wo * co, isz) if flatten_out
                     else tr * _pad2d_bytes(wo, co, isz))
            w_b = ((_pad2d_bytes(9 * ci, co, isz) if fold
                    else 6 * _pad2d_bytes(2 * ci, co, isz))
                   + _pad2d_bytes(1, co, isz))                  # single-buffered
            temps = (tr * _pad2d_bytes(s_len, 2 * ci, isz)      # lo load
                     + tr * _pad2d_bytes(wp2h, 2 * ci, isz)     # hi slab
                     + 6 * _pad2d_bytes(m, 2 * ci, isz)         # tap repacks
                     + (_pad2d_bytes(m, 9 * ci, isz) if fold else 0)
                     + _pad2d_bytes(m, co, 4)                   # f32 accumulator
                     + (_pad2d_bytes(tr, wo * co, isz) if flatten_out
                        else _pad2d_bytes(m, co, isz)))         # output cast/slab
            # inputs/outputs double-buffered; weight/bias single-buffered.
            return 2 * (in_a + in_b + out_b) + w_b + temps

        tr = _pick_row_tile(ho, step_bytes)
        grid = (n, ho // tr)

        if flatten_out:
            out_shape = jax.ShapeDtypeStruct((n, ho, wo * co), x.dtype)
            out_spec = pl.BlockSpec((1, tr, wo * co), lambda b, r: (b, r, 0))
        else:
            out_shape = jax.ShapeDtypeStruct((n, ho, wo, co), x.dtype)
            out_spec = pl.BlockSpec((1, tr, wo, co), lambda b, r: (b, r, 0, 0))

        def run(single_buffer):
            in_specs = [
                pl.BlockSpec((1, tr, s_len, 2 * ci), lambda b, r: (b, r, 0, 0)),
                pl.BlockSpec((1, 1, s_len, 2 * ci),
                             lambda b, r: (b, (r + 1) * tr, 0, 0)),
                _const_spec(w_spec_shape, w_idx, single_buffer),
                _const_spec((1, co), lambda b, r: (0, 0), single_buffer),
            ]
            return pl.pallas_call(
                _conv_down_kernel,
                out_shape=out_shape,
                grid=grid,
                in_specs=in_specs,
                out_specs=out_spec,
                compiler_params=pltpu.CompilerParams(
                    dimension_semantics=("parallel", "parallel"),
                    vmem_limit_bytes=_VMEM_LIMIT),
            )(xp, xp, w_arg, b_row)

        try:
            out = run(True)
        except Exception:
            # Fallback if this JAX build rejects pipeline_mode=pl.Buffered(1).
            out = run(False)

        if flatten_out:
            out = out.reshape(n, ho, wo, co)
    else:
        xe = x[:, :2 * ho, :2 * wo, :]                 # torch floors odd H/W
        s_len = 2 * wo
        xr = xe.reshape(n, ho, s_len, 2 * ci)          # free pairing reshape
        flatten_out = (ci % 128) != 0

        def step_bytes(tr):
            in_b = tr * _pad2d_bytes(s_len, 2 * ci, isz)
            out_b = (_pad2d_bytes(tr, wo * ci, isz) if flatten_out
                     else tr * _pad2d_bytes(wo, ci, isz))
            temps = (tr * _pad2d_bytes(s_len, 2 * ci, isz)      # load
                     + tr * _pad2d_bytes(wo, 2 * ci, isz)       # row sum
                     + tr * _pad2d_bytes(wo, ci, isz)           # pooled
                     + (_pad2d_bytes(tr, wo * ci, isz) if flatten_out else 0))
            return 2 * (in_b + out_b) + temps

        tr = _pick_row_tile(ho, step_bytes)
        grid = (n, ho // tr)

        if flatten_out:
            out_shape = jax.ShapeDtypeStruct((n, ho, wo * ci), x.dtype)
            out_spec = pl.BlockSpec((1, tr, wo * ci), lambda b, r: (b, r, 0))
        else:
            out_shape = jax.ShapeDtypeStruct((n, ho, wo, ci), x.dtype)
            out_spec = pl.BlockSpec((1, tr, wo, ci), lambda b, r: (b, r, 0, 0))

        out = pl.pallas_call(
            _avg_pool_kernel,
            out_shape=out_shape,
            grid=grid,
            in_specs=[pl.BlockSpec((1, tr, s_len, 2 * ci),
                                   lambda b, r: (b, r, 0, 0))],
            out_specs=out_spec,
            compiler_params=pltpu.CompilerParams(
                dimension_semantics=("parallel", "parallel"),
                vmem_limit_bytes=_VMEM_LIMIT),
        )(xr)

        if flatten_out:
            out = out.reshape(n, ho, wo, ci)

    if data_format == "NCHW":
        out = jnp.transpose(out, (0, 3, 1, 2))         # NHWC -> NCHW
    return out


# ---------------------------------------------------------------------------
# Pure-JAX references (verification only)
# ---------------------------------------------------------------------------
def _ref_conv(x_nchw, weight_oihw, bias):
    xp = jnp.pad(x_nchw, ((0, 0), (0, 0), (0, 1), (0, 1)))
    y = jax.lax.conv_general_dilated(
        xp, weight_oihw, window_strides=(2, 2), padding="VALID",
        dimension_numbers=("NCHW", "OIHW", "NCHW"))
    return y + bias[None, :, None, None]


def _ref_avg_pool(x_nchw):
    n, c, h, w = x_nchw.shape
    xr = x_nchw.reshape(n, c, h // 2, 2, w // 2, 2)
    return xr.mean(axis=(3, 5))


# ---------------------------------------------------------------------------
if __name__ == "__main__":
    key = jax.random.PRNGKey(0)
    k_x, k_w, k_b, k_x2, k_w2, k_b2 = jax.random.split(key, 6)

    # ---- small-channel case: folded-K conv path + lane-dense output -------
    N, C, H, W = 2, 4, 16, 16
    x = jax.random.normal(k_x, (N, C, H, W), dtype=jnp.float32)
    weight = jax.random.normal(k_w, (C, C, 3, 3), dtype=jnp.float32) * 0.1
    bias = jax.random.normal(k_b, (C,), dtype=jnp.float32) * 0.1

    y_conv = jax.block_until_ready(downsample(x, True, weight, bias))
    np.testing.assert_allclose(np.asarray(y_conv),
                               np.asarray(_ref_conv(x, weight, bias)),
                               atol=2e-4, rtol=2e-4)
    assert y_conv.shape == (N, C, 8, 8)

    y_pool = jax.block_until_ready(downsample(x, False))
    np.testing.assert_allclose(np.asarray(y_pool), np.asarray(_ref_avg_pool(x)),
                               atol=1e-5, rtol=1e-5)
    assert y_pool.shape == (N, C, 8, 8)

    # ---- wide-channel case: six-dot conv path + non-flattened output ------
    N2, C2 = 1, 128
    x2 = jax.random.normal(k_x2, (N2, C2, H, W), dtype=jnp.float32)
    weight2 = jax.random.normal(k_w2, (C2, C2, 3, 3), dtype=jnp.float32) * 0.05
    bias2 = jax.random.normal(k_b2, (C2,), dtype=jnp.float32) * 0.1

    y_conv2 = jax.block_until_ready(downsample(x2, True, weight2, bias2))
    np.testing.assert_allclose(np.asarray(y_conv2),
                               np.asarray(_ref_conv(x2, weight2, bias2)),
                               atol=2e-2, rtol=2e-2)
    assert y_conv2.shape == (N2, C2, 8, 8)

    y_pool2 = jax.block_until_ready(downsample(x2, False))
    np.testing.assert_allclose(np.asarray(y_pool2),
                               np.asarray(_ref_avg_pool(x2)),
                               atol=1e-5, rtol=1e-5)
    assert y_pool2.shape == (N2, C2, 8, 8)

    # ---- bf16 pool smoke test (native-dtype VPU path) ----------------------
    x_bf16 = x.astype(jnp.bfloat16)
    y_pool_bf16 = jax.block_until_ready(downsample(x_bf16, False))
    np.testing.assert_allclose(
        np.asarray(y_pool_bf16.astype(jnp.float32)),
        np.asarray(_ref_avg_pool(x_bf16.astype(jnp.float32))),
        atol=2e-2, rtol=2e-2)

    print("KERNEL_OK")
</pallas_src>

<mosaic_0001>
module attributes {stable_mosaic.version = 11 : i64} {
  func.func @_conv_down_kernel(%arg0: i32, %arg1: i32, %arg2: memref<1x8x18x8xf32, #tpu.memory_space<vmem>>, %arg3: memref<1x1x18x8xf32, #tpu.memory_space<vmem>>, %arg4: memref<36x4xf32, #tpu.memory_space<vmem>>, %arg5: memref<1x4xf32, #tpu.memory_space<vmem>>, %arg6: memref<1x8x32xf32, #tpu.memory_space<vmem>>) attributes {dimension_semantics = [#tpu.dimension_semantics<parallel>, #tpu.dimension_semantics<parallel>], iteration_bounds = array<i64: 2, 1>, scalar_prefetch = 0 : i64, scratch_operands = 0 : i64, tpu.core_type = #tpu.core_type<tc>, window_params = [{transform_indices = @transform_0, window_bounds = array<i64: 1, 8, 18, 8>}, {transform_indices = @transform_1, window_bounds = array<i64: 1, 1, 18, 8>}, {pipeline_mode = #tpu.pipeline_mode<synchronous>, transform_indices = @transform_2, window_bounds = array<i64: 36, 4>}, {pipeline_mode = #tpu.pipeline_mode<synchronous>, transform_indices = @transform_3, window_bounds = array<i64: 1, 4>}, {transform_indices = @transform_4, window_bounds = array<i64: 1, 8, 32>}]} {
    %c0 = arith.constant 0 : index
    %c0_0 = arith.constant 0 : index
    %c0_1 = arith.constant 0 : index
    %c0_2 = arith.constant 0 : index
    %0 = vector.load %arg2[%c0, %c0_0, %c0_1, %c0_2] : memref<1x8x18x8xf32, #tpu.memory_space<vmem>>, vector<1x8x18x8xf32>
    %1 = vector.shape_cast %0 : vector<1x8x18x8xf32> to vector<8x18x8xf32>
    %2 = vector.extract_strided_slice %1 {offsets = [1, 0, 0], sizes = [7, 9, 8], strides = [1, 1, 1]} : vector<8x18x8xf32> to vector<7x9x8xf32>
    %c0_3 = arith.constant 0 : index
    %c0_4 = arith.constant 0 : index
    %c0_5 = arith.constant 0 : index
    %c0_6 = arith.constant 0 : index
    %3 = vector.load %arg3[%c0_3, %c0_4, %c0_5, %c0_6] : memref<1x1x18x8xf32, #tpu.memory_space<vmem>>, vector<1x1x18x8xf32>
    %4 = vector.shape_cast %3 : vector<1x1x18x8xf32> to vector<1x18x8xf32>
    %5 = vector.extract_strided_slice %4 {offsets = [0, 0, 0], sizes = [1, 9, 8], strides = [1, 1, 1]} : vector<1x18x8xf32> to vector<1x9x8xf32>
    %6 = tpu.concatenate %2, %5 in 0 : vector<7x9x8xf32>, vector<1x9x8xf32> -> vector<8x9x8xf32>
    %7 = vector.extract_strided_slice %1 {offsets = [0, 0, 0], sizes = [8, 8, 8], strides = [1, 1, 1]} : vector<8x18x8xf32> to vector<8x8x8xf32>
    %8 = vector.shape_cast %7 : vector<8x8x8xf32> to vector<64x8xf32>
    %9 = vector.extract_strided_slice %1 {offsets = [0, 1, 0], sizes = [8, 8, 8], strides = [1, 1, 1]} : vector<8x18x8xf32> to vector<8x8x8xf32>
    %10 = vector.shape_cast %9 : vector<8x8x8xf32> to vector<64x8xf32>
    %11 = vector.extract_strided_slice %1 {offsets = [0, 9, 0], sizes = [8, 8, 8], strides = [1, 1, 1]} : vector<8x18x8xf32> to vector<8x8x8xf32>
    %12 = vector.shape_cast %11 : vector<8x8x8xf32> to vector<64x8xf32>
    %13 = vector.extract_strided_slice %1 {offsets = [0, 10, 0], sizes = [8, 8, 8], strides = [1, 1, 1]} : vector<8x18x8xf32> to vector<8x8x8xf32>
    %14 = vector.shape_cast %13 : vector<8x8x8xf32> to vector<64x8xf32>
    %15 = vector.extract_strided_slice %6 {offsets = [0, 0, 0], sizes = [8, 8, 8], strides = [1, 1, 1]} : vector<8x9x8xf32> to vector<8x8x8xf32>
    %16 = vector.shape_cast %15 : vector<8x8x8xf32> to vector<64x8xf32>
    %17 = vector.extract_strided_slice %6 {offsets = [0, 1, 0], sizes = [8, 8, 8], strides = [1, 1, 1]} : vector<8x9x8xf32> to vector<8x8x8xf32>
    %18 = vector.shape_cast %17 : vector<8x8x8xf32> to vector<64x8xf32>
    %c0_7 = arith.constant 0 : index
    %c0_8 = arith.constant 0 : index
    %19 = vector.load %arg5[%c0_7, %c0_8] : memref<1x4xf32, #tpu.memory_space<vmem>>, vector<1x4xf32>
    %20 = vector.extract_strided_slice %10 {offsets = [0, 0], sizes = [64, 4], strides = [1, 1]} : vector<64x8xf32> to vector<64x4xf32>
    %21 = vector.extract_strided_slice %14 {offsets = [0, 0], sizes = [64, 4], strides = [1, 1]} : vector<64x8xf32> to vector<64x4xf32>
    %22 = vector.extract_strided_slice %18 {offsets = [0, 0], sizes = [64, 4], strides = [1, 1]} : vector<64x8xf32> to vector<64x4xf32>
    %23 = tpu.concatenate %8, %20, %12, %21, %16, %22 in 1 : vector<64x8xf32>, vector<64x4xf32>, vector<64x8xf32>, vector<64x4xf32>, vector<64x8xf32>, vector<64x4xf32> -> vector<64x36xf32>
    %c0_9 = arith.constant 0 : index
    %c0_10 = arith.constant 0 : index
    %24 = vector.load %arg4[%c0_9, %c0_10] : memref<36x4xf32, #tpu.memory_space<vmem>>, vector<36x4xf32>
    %cst = arith.constant dense<0.000000e+00> : vector<64x4xf32>
    %25 = tpu.matmul %23, %24, %cst {dimension_numbers = #tpu.dot_dimension_numbers<[1], [0], [0], [1], [0, 0, 1, 1], [], []>} : vector<64x36xf32>, vector<36x4xf32>, vector<64x4xf32> -> vector<64x4xf32>
    %26 = vector.broadcast %19 : vector<1x4xf32> to vector<64x4xf32>
    %27 = arith.addf %25, %26 : vector<64x4xf32>
    %28 = vector.shape_cast %27 : vector<64x4xf32> to vector<8x8x4xf32>
    %29 = vector.extract_strided_slice %28 {offsets = [0, 0, 0], sizes = [8, 1, 4], strides = [1, 1, 1]} : vector<8x8x4xf32> to vector<8x1x4xf32>
    %30 = vector.shape_cast %29 : vector<8x1x4xf32> to vector<8x4xf32>
    %31 = vector.extract_strided_slice %28 {offsets = [0, 1, 0], sizes = [8, 1, 4], strides = [1, 1, 1]} : vector<8x8x4xf32> to vector<8x1x4xf32>
    %32 = vector.shape_cast %31 : vector<8x1x4xf32> to vector<8x4xf32>
    %33 = vector.extract_strided_slice %28 {offsets = [0, 2, 0], sizes = [8, 1, 4], strides = [1, 1, 1]} : vector<8x8x4xf32> to vector<8x1x4xf32>
    %34 = vector.shape_cast %33 : vector<8x1x4xf32> to vector<8x4xf32>
    %35 = vector.extract_strided_slice %28 {offsets = [0, 3, 0], sizes = [8, 1, 4], strides = [1, 1, 1]} : vector<8x8x4xf32> to vector<8x1x4xf32>
    %36 = vector.shape_cast %35 : vector<8x1x4xf32> to vector<8x4xf32>
    %37 = vector.extract_strided_slice %28 {offsets = [0, 4, 0], sizes = [8, 1, 4], strides = [1, 1, 1]} : vector<8x8x4xf32> to vector<8x1x4xf32>
    %38 = vector.shape_cast %37 : vector<8x1x4xf32> to vector<8x4xf32>
    %39 = vector.extract_strided_slice %28 {offsets = [0, 5, 0], sizes = [8, 1, 4], strides = [1, 1, 1]} : vector<8x8x4xf32> to vector<8x1x4xf32>
    %40 = vector.shape_cast %39 : vector<8x1x4xf32> to vector<8x4xf32>
    %41 = vector.extract_strided_slice %28 {offsets = [0, 6, 0], sizes = [8, 1, 4], strides = [1, 1, 1]} : vector<8x8x4xf32> to vector<8x1x4xf32>
    %42 = vector.shape_cast %41 : vector<8x1x4xf32> to vector<8x4xf32>
    %43 = vector.extract_strided_slice %28 {offsets = [0, 7, 0], sizes = [8, 1, 4], strides = [1, 1, 1]} : vector<8x8x4xf32> to vector<8x1x4xf32>
    %44 = vector.shape_cast %43 : vector<8x1x4xf32> to vector<8x4xf32>
    %45 = tpu.concatenate %30, %32, %34, %36, %38, %40, %42, %44 in 1 : vector<8x4xf32>, vector<8x4xf32>, vector<8x4xf32>, vector<8x4xf32>, vector<8x4xf32>, vector<8x4xf32>, vector<8x4xf32>, vector<8x4xf32> -> vector<8x32xf32>
    %46 = vector.shape_cast %45 : vector<8x32xf32> to vector<1x8x32xf32>
    %c0_11 = arith.constant 0 : index
    %c0_12 = arith.constant 0 : index
    %c0_13 = arith.constant 0 : index
    %47 = vector.load %arg6[%c0_11, %c0_12, %c0_13] : memref<1x8x32xf32, #tpu.memory_space<vmem>>, vector<1x8x32xf32>
    tpu.vector_store %arg6[%c0_11, %c0_12, %c0_13], %46 {strides = array<i32>} : memref<1x8x32xf32, #tpu.memory_space<vmem>>, vector<1x8x32xf32>,
    return
  }
  func.func @transform_0(%arg0: i32, %arg1: i32) -> (i32, i32, i32, i32) {
    %c0_i32 = arith.constant 0 : i32
    %c0_i32_0 = arith.constant 0 : i32
    %c0_i32_1 = arith.constant 0 : i32
    return %arg0, %arg1, %c0_i32, %c0_i32_0 : i32, i32, i32, i32
  }
  func.func @transform_1(%arg0: i32, %arg1: i32) -> (i32, i32, i32, i32) {
    %c1_i32 = arith.constant 1 : i32
    %0 = arith.addi %arg1, %c1_i32 : i32
    %c8_i32 = arith.constant 8 : i32
    %1 = arith.muli %0, %c8_i32 : i32
    %c0_i32 = arith.constant 0 : i32
    %c0_i32_0 = arith.constant 0 : i32
    %c0_i32_1 = arith.constant 0 : i32
    return %arg0, %1, %c0_i32, %c0_i32_0 : i32, i32, i32, i32
  }
  func.func @transform_2(%arg0: i32, %arg1: i32) -> (i32, i32) {
    %c0_i32 = arith.constant 0 : i32
    %c0_i32_0 = arith.constant 0 : i32
    %c0_i32_1 = arith.constant 0 : i32
    return %c0_i32, %c0_i32_0 : i32, i32
  }
  func.func @transform_3(%arg0: i32, %arg1: i32) -> (i32, i32) {
    %c0_i32 = arith.constant 0 : i32
    %c0_i32_0 = arith.constant 0 : i32
    %c0_i32_1 = arith.constant 0 : i32
    return %c0_i32, %c0_i32_0 : i32, i32
  }
  func.func @transform_4(%arg0: i32, %arg1: i32) -> (i32, i32, i32) {
    %c0_i32 = arith.constant 0 : i32
    %c0_i32_0 = arith.constant 0 : i32
    return %arg0, %arg1, %c0_i32 : i32, i32, i32
  }
}

module attributes {stable_mosaic.version = 11 : i64} {
  func.func @_conv_down_kernel(%arg0: i32, %arg1: i32, %arg2: memref<1x8x18x8xf32, #tpu.memory_space<vmem>>, %arg3: memref<1x1x18x8xf32, #tpu.memory_space<vmem>>, %arg4: memref<36x4xf32, #tpu.memory_space<vmem>>, %arg5: memref<1x4xf32, #tpu.memory_space<vmem>>, %arg6: memref<1x8x32xf32, #tpu.memory_space<vmem>>) attributes {dimension_semantics = [#tpu.dimension_semantics<parallel>, #tpu.dimension_semantics<parallel>], iteration_bounds = array<i64: 2, 1>, scalar_prefetch = 0 : i64, scratch_operands = 0 : i64, tpu.core_type = #tpu.core_type<tc>, window_params = [{transform_indices = @transform_0, window_bounds = array<i64: 1, 8, 18, 8>}, {transform_indices = @transform_1, window_bounds = array<i64: 1, 1, 18, 8>}, {pipeline_mode = #tpu.pipeline_mode<synchronous>, transform_indices = @transform_2, window_bounds = array<i64: 36, 4>}, {pipeline_mode = #tpu.pipeline_mode<synchronous>, transform_indices = @transform_3, window_bounds = array<i64: 1, 4>}, {transform_indices = @transform_4, window_bounds = array<i64: 1, 8, 32>}]} {
    %c0 = arith.constant 0 : index
    %c0_0 = arith.constant 0 : index
    %c0_1 = arith.constant 0 : index
    %c0_2 = arith.constant 0 : index
    %0 = vector.load %arg2[%c0, %c0_0, %c0_1, %c0_2] : memref<1x8x18x8xf32, #tpu.memory_space<vmem>>, vector<1x8x18x8xf32>
    %1 = vector.shape_cast %0 : vector<1x8x18x8xf32> to vector<8x18x8xf32>
    %2 = vector.extract_strided_slice %1 {offsets = [1, 0, 0], sizes = [7, 9, 8], strides = [1, 1, 1]} : vector<8x18x8xf32> to vector<7x9x8xf32>
    %c0_3 = arith.constant 0 : index
    %c0_4 = arith.constant 0 : index
    %c0_5 = arith.constant 0 : index
    %c0_6 = arith.constant 0 : index
    %3 = vector.load %arg3[%c0_3, %c0_4, %c0_5, %c0_6] : memref<1x1x18x8xf32, #tpu.memory_space<vmem>>, vector<1x1x18x8xf32>
    %4 = vector.shape_cast %3 : vector<1x1x18x8xf32> to vector<1x18x8xf32>
    %5 = vector.extract_strided_slice %4 {offsets = [0, 0, 0], sizes = [1, 9, 8], strides = [1, 1, 1]} : vector<1x18x8xf32> to vector<1x9x8xf32>
    %6 = tpu.concatenate %2, %5 in 0 : vector<7x9x8xf32>, vector<1x9x8xf32> -> vector<8x9x8xf32>
    %7 = vector.extract_strided_slice %1 {offsets = [0, 0, 0], sizes = [8, 8, 8], strides = [1, 1, 1]} : vector<8x18x8xf32> to vector<8x8x8xf32>
    %8 = vector.shape_cast %7 : vector<8x8x8xf32> to vector<64x8xf32>
    %9 = vector.extract_strided_slice %1 {offsets = [0, 1, 0], sizes = [8, 8, 8], strides = [1, 1, 1]} : vector<8x18x8xf32> to vector<8x8x8xf32>
    %10 = vector.shape_cast %9 : vector<8x8x8xf32> to vector<64x8xf32>
    %11 = vector.extract_strided_slice %1 {offsets = [0, 9, 0], sizes = [8, 8, 8], strides = [1, 1, 1]} : vector<8x18x8xf32> to vector<8x8x8xf32>
    %12 = vector.shape_cast %11 : vector<8x8x8xf32> to vector<64x8xf32>
    %13 = vector.extract_strided_slice %1 {offsets = [0, 10, 0], sizes = [8, 8, 8], strides = [1, 1, 1]} : vector<8x18x8xf32> to vector<8x8x8xf32>
    %14 = vector.shape_cast %13 : vector<8x8x8xf32> to vector<64x8xf32>
    %15 = vector.extract_strided_slice %6 {offsets = [0, 0, 0], sizes = [8, 8, 8], strides = [1, 1, 1]} : vector<8x9x8xf32> to vector<8x8x8xf32>
    %16 = vector.shape_cast %15 : vector<8x8x8xf32> to vector<64x8xf32>
    %17 = vector.extract_strided_slice %6 {offsets = [0, 1, 0], sizes = [8, 8, 8], strides = [1, 1, 1]} : vector<8x9x8xf32> to vector<8x8x8xf32>
    %18 = vector.shape_cast %17 : vector<8x8x8xf32> to vector<64x8xf32>
    %c0_7 = arith.constant 0 : index
    %c0_8 = arith.constant 0 : index
    %19 = vector.load %arg5[%c0_7, %c0_8] : memref<1x4xf32, #tpu.memory_space<vmem>>, vector<1x4xf32>
    %20 = vector.extract_strided_slice %10 {offsets = [0, 0], sizes = [64, 4], strides = [1, 1]} : vector<64x8xf32> to vector<64x4xf32>
    %21 = vector.extract_strided_slice %14 {offsets = [0, 0], sizes = [64, 4], strides = [1, 1]} : vector<64x8xf32> to vector<64x4xf32>
    %22 = vector.extract_strided_slice %18 {offsets = [0, 0], sizes = [64, 4], strides = [1, 1]} : vector<64x8xf32> to vector<64x4xf32>
    %23 = tpu.concatenate %8, %20, %12, %21, %16, %22 in 1 : vector<64x8xf32>, vector<64x4xf32>, vector<64x8xf32>, vector<64x4xf32>, vector<64x8xf32>, vector<64x4xf32> -> vector<64x36xf32>
    %c0_9 = arith.constant 0 : index
    %c0_10 = arith.constant 0 : index
    %24 = vector.load %arg4[%c0_9, %c0_10] : memref<36x4xf32, #tpu.memory_space<vmem>>, vector<36x4xf32>
    %cst = arith.constant dense<0.000000e+00> : vector<64x4xf32>
    %25 = tpu.matmul %23, %24, %cst {dimension_numbers = #tpu.dot_dimension_numbers<[1], [0], [0], [1], [0, 0, 1, 1], [], []>} : vector<64x36xf32>, vector<36x4xf32>, vector<64x4xf32> -> vector<64x4xf32>
    %26 = vector.broadcast %19 : vector<1x4xf32> to vector<64x4xf32>
    %27 = arith.addf %25, %26 : vector<64x4xf32>
    %28 = vector.shape_cast %27 : vector<64x4xf32> to vector<8x8x4xf32>
    %29 = vector.extract_strided_slice %28 {offsets = [0, 0, 0], sizes = [8, 1, 4], strides = [1, 1, 1]} : vector<8x8x4xf32> to vector<8x1x4xf32>
    %30 = vector.shape_cast %29 : vector<8x1x4xf32> to vector<8x4xf32>
    %31 = vector.extract_strided_slice %28 {offsets = [0, 1, 0], sizes = [8, 1, 4], strides = [1, 1, 1]} : vector<8x8x4xf32> to vector<8x1x4xf32>
    %32 = vector.shape_cast %31 : vector<8x1x4xf32> to vector<8x4xf32>
    %33 = vector.extract_strided_slice %28 {offsets = [0, 2, 0], sizes = [8, 1, 4], strides = [1, 1, 1]} : vector<8x8x4xf32> to vector<8x1x4xf32>
    %34 = vector.shape_cast %33 : vector<8x1x4xf32> to vector<8x4xf32>
    %35 = vector.extract_strided_slice %28 {offsets = [0, 3, 0], sizes = [8, 1, 4], strides = [1, 1, 1]} : vector<8x8x4xf32> to vector<8x1x4xf32>
    %36 = vector.shape_cast %35 : vector<8x1x4xf32> to vector<8x4xf32>
    %37 = vector.extract_strided_slice %28 {offsets = [0, 4, 0], sizes = [8, 1, 4], strides = [1, 1, 1]} : vector<8x8x4xf32> to vector<8x1x4xf32>
    %38 = vector.shape_cast %37 : vector<8x1x4xf32> to vector<8x4xf32>
    %39 = vector.extract_strided_slice %28 {offsets = [0, 5, 0], sizes = [8, 1, 4], strides = [1, 1, 1]} : vector<8x8x4xf32> to vector<8x1x4xf32>
    %40 = vector.shape_cast %39 : vector<8x1x4xf32> to vector<8x4xf32>
    %41 = vector.extract_strided_slice %28 {offsets = [0, 6, 0], sizes = [8, 1, 4], strides = [1, 1, 1]} : vector<8x8x4xf32> to vector<8x1x4xf32>
    %42 = vector.shape_cast %41 : vector<8x1x4xf32> to vector<8x4xf32>
    %43 = vector.extract_strided_slice %28 {offsets = [0, 7, 0], sizes = [8, 1, 4], strides = [1, 1, 1]} : vector<8x8x4xf32> to vector<8x1x4xf32>
    %44 = vector.shape_cast %43 : vector<8x1x4xf32> to vector<8x4xf32>
    %45 = tpu.concatenate %30, %32, %34, %36, %38, %40, %42, %44 in 1 : vector<8x4xf32>, vector<8x4xf32>, vector<8x4xf32>, vector<8x4xf32>, vector<8x4xf32>, vector<8x4xf32>, vector<8x4xf32>, vector<8x4xf32> -> vector<8x32xf32>
    %46 = vector.shape_cast %45 : vector<8x32xf32> to vector<1x8x32xf32>
    %c0_11 = arith.constant 0 : index
    %c0_12 = arith.constant 0 : index
    %c0_13 = arith.constant 0 : index
    %47 = vector.load %arg6[%c0_11, %c0_12, %c0_13] : memref<1x8x32xf32, #tpu.memory_space<vmem>>, vector<1x8x32xf32>
    tpu.vector_store %arg6[%c0_11, %c0_12, %c0_13], %46 {strides = array<i32>} : memref<1x8x32xf32, #tpu.memory_space<vmem>>, vector<1x8x32xf32>,
    return
  }
  func.func @transform_0(%arg0: i32, %arg1: i32) -> (i32, i32, i32, i32) {
    %c0_i32 = arith.constant 0 : i32
    %c0_i32_0 = arith.constant 0 : i32
    %c0_i32_1 = arith.constant 0 : i32
    return %arg0, %arg1, %c0_i32, %c0_i32_0 : i32, i32, i32, i32
  }
  func.func @transform_1(%arg0: i32, %arg1: i32) -> (i32, i32, i32, i32) {
    %c1_i32 = arith.constant 1 : i32
    %0 = arith.addi %arg1, %c1_i32 : i32
    %c8_i32 = arith.constant 8 : i32
    %1 = arith.muli %0, %c8_i32 : i32
    %c0_i32 = arith.constant 0 : i32
    %c0_i32_0 = arith.constant 0 : i32
    %c0_i32_1 = arith.constant 0 : i32
    return %arg0, %1, %c0_i32, %c0_i32_0 : i32, i32, i32, i32
  }
  func.func @transform_2(%arg0: i32, %arg1: i32) -> (i32, i32) {
    %c0_i32 = arith.constant 0 : i32
    %c0_i32_0 = arith.constant 0 : i32
    %c0_i32_1 = arith.constant 0 : i32
    return %c0_i32, %c0_i32_0 : i32, i32
  }
  func.func @transform_3(%arg0: i32, %arg1: i32) -> (i32, i32) {
    %c0_i32 = arith.constant 0 : i32
    %c0_i32_0 = arith.constant 0 : i32
    %c0_i32_1 = arith.constant 0 : i32
    return %c0_i32, %c0_i32_0 : i32, i32
  }
  func.func @transform_4(%arg0: i32, %arg1: i32) -> (i32, i32, i32) {
    %c0_i32 = arith.constant 0 : i32
    %c0_i32_0 = arith.constant 0 : i32
    return %arg0, %arg1, %c0_i32 : i32, i32, i32
  }
}

</mosaic_0001>

<bundles_post_ra>
// kernel: tpu_custom_call.1
= control target key start
LH: loop header
LB: loop body
LE: loop exit
PB: predicated region body
PF: predicated region fallthrough
CT: control target
= control target key end

     0   :  { %9 = vsyncpa [#allocation3], 0  ;;  %s1756_s0 = inlined_call_operand.vmem [shape: f32[2,9,18,8], index: 0, kind: input, shape index: {}]   ;;  %s1757_s1 = inlined_call_operand.vmem [shape: f32[2,9,18,8], index: 1, kind: input, shape index: {}]   ;;  %s1758_s2 = inlined_call_operand.vmem [shape: f32[36,4], index: 2, kind: input, shape index: {}]   ;;  %s1759_s3 = inlined_call_operand.vmem [shape: f32[1,4], index: 3, kind: input, shape index: {}]   ;;  %s1760_s4 = inlined_call_operand.hbm [shape: f32[2,8,32], index: 4, kind: output, shape index: {}]  }
   0x1   :  { %11 = vsyncpa [#allocation3 + $0x1], 0  ;;  %s1254_s15 = smov 0   ;;  %s1256_s16 = smov 0  }
   0x2   :  { %s1258_s17 = smov 0   ;;  %s1260_s18 = smov 0  }
   0x3   :  { %s1262_s19 = smov 0   ;;  %s1264_s20 = smov 0  }
   0x4 LB: > { %s1007_s21 = sadd.s32 4294967295, %s1218_s20   ;;  %s1008_s22 = sadd.s32 4294967294, %s1218_s20   ;;  %s1218_s20 = sphi %s1264_s20, %s17_s20   ;;  %s1214_s19 = sphi %s1262_s19, %s1767_s19   ;;  %s1210_s18 = sphi %s1260_s18, %s1766_s18   ;;  %s1206_s17 = sphi %s1258_s17, %s1765_s17   ;;  %s1202_s16 = sphi %s1256_s16, %s1764_s16   ;;  %s1198_s15 = sphi %s1254_s15, %s1763_s15  }
   0x5   : > { %s29_s23 = sadd.s32 1, %s1214_s19  ;;  %s140_s24 = sadd.s32 1, %s1206_s17 }
   0x6   : > { %p31_p0 = scmp.ge.s32.totalorder %s29_s23, 2  ;;  %p150_p1 = scmp.ne.s32.totalorder %s1206_s17, %s1202_s16 }
   0x7   : > { %p151_p2 = scmp.eq.s32.totalorder %s1007_s21, 1  ;;  %p156_p3 = scmp.ne.s32.totalorder %s1202_s16, %s1198_s15 }
   0x8   : > { %s1769_s23 = smov (%p31_p0, %s29_s23), 0  ;;  %p157_p5 = scmp.eq.s32.totalorder %s1008_s22, 1 }
   0x9   : > { %p1294_p4 = por %p151_p2, %p150_p1  ;;  %s135_s26 = ssub.s32 %s1214_s19, %s1769_s23 }
   0xa   : > { %p1011_p6 = scmp.ge.s32.totalorder %s1218_s20, 1  ;;  %p138_p7 = scmp.eq.s32.totalorder %s135_s26, 0 }
   0xb   : > { %p1301_p8 = por %p157_p5, %p156_p3  ;;  %p221_p9 = scmp.lt.s32.totalorder %s1218_s20, 3 }
   0xc   : > { %s1307_s28 = scalar_select %p138_p7, %s1206_s17, %s140_s24  }
   0xd   : > { %p222_p10 = pnand %p1011_p6, %p221_p9 }
   0xe   : > { %p274_p11 = scmp.lt.s32.totalorder (!%p222_p10), %s1210_s18, 1  ;;  %s1220_s8 = smov (!%p222_p10), 12  }
   0xf   : > { %225 = sbr.rel (%p222_p10) target bundleno = 564 (0x234), region = 36  ;;  %s1221_s9 = smov (!%p222_p10), 8  }
  0x10   : > { %s1222_s14 = smov (!%p222_p10), 20   ;;  %s1223_s24 = smov (!%p222_p10), 24  }
  0x11   : > { %s1224_s11 = smov (!%p222_p10), 32   ;;  %s1225_s22 = smov (!%p222_p10), 4  }
  0x12   : > { %s265_s26 = sand.u32 (!%p222_p10), 1, %s1202_s16  }
  0x14   : > { %s1311_s29 = scalar_select %p274_p11, %s1210_s18, 1  ;;  %vm344_vm0 = vcmask 1046528   ;;  %vm393_vm1 = vcmask 1045504   ;;  %v593_v39 = vld [vmem:[%s1758_s2 + $0x20] sm:$0xf]  ;;  %vm625_vm2 = vcmask 1043456  }
  0x15   : > { %1044 = vmatprep.subr.msk.mxu0 %vm625_vm2, %v593_v39  ;;  %v592_v49 = vld [vmem:[%s1758_s2 + $0x18] sm:$0xff]  ;;  %1066 = vmatprep.subr.msk.mxu1 %vm625_vm2, %v593_v39  ;;  %v591_v51 = vld [vmem:[%s1758_s2 + $0x10] sm:$0xff]  ;;  %v590_v57 = vld [vmem:[%s1758_s2 + $0x8] sm:$0xff]  ;;  %vm544_vm3 = vcmask 64512   ;;  %vm553_vm4 = vcmask 97280   ;;  %vm562_vm5 = vcmask 162816  }
  0x16   : > { %s1076_s30 = smul.u32 216, %s1311_s29  ;;  %1045 = vmatpush3.msk.msra.mxu0 %vm625_vm2, %v593_v39  ;;  %1071 = vmatpush3.msk.msra.mxu1 %vm625_vm2, %v593_v39  ;;  %v589_v63 = vld [vmem:[%s1758_s2] sm:$0xff]  ;;  %vm571_vm6 = vcmask 195584   ;;  %vm580_vm7 = vcmask 261120   ;;  %vm600_vm8 = vcmask 293888   ;;  %vm743_vm9 = vcmask 1041409  }
  0x17   : > { %1046 = vmatprep.subr.mxu0 %v592_v49  ;;  %1067 = vmatprep.subr.mxu1 %v592_v49  ;;  %vm746_vm10 = vcmask 1042434   ;;  %vm749_vm11 = vcmask 1043459   ;;  %vm752_vm12 = vcmask 1044484   ;;  %vm755_vm13 = vcmask 1045509   ;;  %s1012_s29 = sshll.u32 %s265_s26, 3 }
  0x18   : > { %s1319_s7 = scalar_lea.vmem %s1756_s0, %s1076_s30  ;;  %s1030_s10 = sadd.s32 192, %s1076_s30  ;;  %1047 = vmatpush3.msra.mxu0 %v592_v49  ;;  %1072 = vmatpush3.msra.mxu1 %v592_v49  ;;  %vm758_vm14 = vcmask 1046534   ;;  %vm761_vm15 = vcmask 1047559   ;;  %vm891_vm2 = vcmask 228352  }
  0x19   : > { %v303_v0 = vld [vmem:[%s1319_s7 + $0x8] sm:$0xff]  ;;  %v304_v1 = vld [vmem:[%s1319_s7 + $0x10] sm:$0x3]  ;;  %v1324_v2 = vld [vmem:[%s1319_s7] sm:$0xff]  ;;  %s299_s13 = scalar_lea.vmem %s1757_s1, %s1030_s10  ;;  %1048 = vmatprep.subr.mxu0 %v591_v51  ;;  %1068 = vmatprep.subr.mxu1 %v591_v51 }
  0x1a   : > { %v346_v3 = vrot.slane %v303_v0, 1  ;;  %v377_v4 = vrot.slane %v304_v1, 1  ;;  %v345_v5 = vrot.slane %v1324_v2, 1  ;;  %v306_v6 = vld [vmem:[%s1319_s7 + $0x20] sm:$0xff]  ;;  %v307_v7 = vld [vmem:[%s1319_s7 + $0x28] sm:$0x3]  ;;  %1049 = vmatpush3.msra.mxu0 %v591_v51  ;;  %1073 = vmatpush3.msra.mxu1 %v591_v51 }
  0x1b   : > { %v349_v8 = vrot.slane %v306_v6, 1  ;;  %v379_v9 = vrot.slane %v307_v7, 1  ;;  %v1330_v10 = vld [vmem:[%s1319_s7 + $0x18] sm:$0xff]  ;;  %v397_v14 = vrot.slane %v306_v6, 2  ;;  %v398_v15 = vrot.slane %v307_v7, 2  ;;  %v1342_v20 = vld [vmem:[%s1319_s7 + $0x30] sm:$0xff]  ;;  %1050 = vmatprep.subr.mxu0 %v590_v57  ;;  %1069 = vmatprep.subr.mxu1 %v590_v57 }
  0x1c   : > { %v378_v11 = vsel %vm344_vm0, %v346_v3, %v377_v4  ;;  %v347_v12 = vsel %vm344_vm0, %v345_v5, %v346_v3  ;;  %v348_v13 = vrot.slane %v1330_v10, 1  ;;  %v394_v18 = vrot.slane %v303_v0, 2  ;;  %v1345_v21 = vld [vmem:[%s1319_s7 + $0x38] sm:$0xff]  ;;  %v1357_v26 = vld [vmem:[%s1319_s7 + $0x60] sm:$0xff]  ;;  %v1360_v27 = vld [vmem:[%s1319_s7 + $0x68] sm:$0xff]  ;;  %1051 = vmatpush3.msra.mxu0 %v590_v57  ;;  %1074 = vmatpush3.msra.mxu1 %v590_v57 }
  0x1d   : > { %448 = vrot.lane.b32.xlu1 %v378_v11, %s1220_s8  ;;  %424 = vrot.lane.b32.xlu0 %v347_v12, %s1221_s9  ;;  %v380_v16 = vsel %vm344_vm0, %v349_v8, %v379_v9  ;;  %v395_v19 = vrot.slane %v304_v1, 2  ;;  %v399_v22 = vsel %vm393_vm1, %v397_v14, %v398_v15  ;;  %v351_v24 = vrot.slane %v1342_v20, 1  ;;  %v1366_v28 = vld [vmem:[%s1319_s7 + $0xb0] sm:$0xff]  ;;  %v1369_v29 = vld [vmem:[%s1319_s7 + $0xb8] sm:$0x3] }
  0x1e   : > { %v1339_v17 = vsel %vm344_vm0, %v348_v13, %v349_v8  ;;  %v352_v25 = vrot.slane %v1345_v21, 1  ;;  %v357_v31 = vrot.slane %v1357_v26, 1  ;;  %v358_v32 = vrot.slane %v1360_v27, 1  ;;  %v1379_v33 = vld [vmem:[%s1319_s7 + $0x48] sm:$0xff]  ;;  %v1381_v34 = vld [vmem:[%s299_s13] sm:$0xff]  ;;  %v1384_v35 = vld [vmem:[%s1319_s7 + $0x50] sm:$0xff]  ;;  %1052 = vmatprep.subr.mxu0 %v589_v63  ;;  %1070 = vmatprep.subr.mxu1 %v589_v63 }
  0x1f   : > { %v396_v23 = vsel %vm393_vm1, %v394_v18, %v395_v19  ;;  %v367_v36 = vrot.slane %v1366_v28, 1  ;;  %v391_v37 = vrot.slane %v1369_v29, 1  ;;  %v327_v38 = vld [vmem:[%s299_s13 + $0x8] sm:$0xff]  ;;  %v354_v40 = vrot.slane %v1379_v33, 1  ;;  %v1407_v45 = vld [vmem:[%s1319_s7 + $0x40] sm:$0x3]  ;;  %1053 = vmatpush3.msra.mxu0 %v589_v63  ;;  %1075 = vmatpush3.msra.mxu1 %v589_v63 }
  0x20   : > { %v1374_v30 = vsel %vm344_vm0, %v351_v24, %v352_v25  ;;  %v420_v42 = vrot.slane %v1381_v34, 1  ;;  %v1403_v43 = vsel %vm344_vm0, %v357_v31, %v358_v32  ;;  %v355_v44 = vrot.slane %v1384_v35, 1  ;;  %v1410_v47 = vld [vmem:[%s1319_s7 + $0x78] sm:$0xff]  ;;  %v1413_v48 = vld [vmem:[%s1319_s7 + $0x80] sm:$0xff]  ;;  %v316_v56 = vld [vmem:[%s1319_s7 + $0x70] sm:$0x3] }
  0x21   : > { %450 = vrot.lane.b32.xlu1 %v380_v16, %s1220_s8  ;;  %426 = vrot.lane.b32.xlu0 %v1339_v17, %s1221_s9  ;;  %v1399_v41 = vsel %vm344_vm0, %v367_v36, %v391_v37  ;;  %v421_v46 = vrot.slane %v327_v38, 1  ;;  %v381_v53 = vrot.slane %v1407_v45, 1  ;;  %v360_v54 = vrot.slane %v1410_v47, 1  ;;  %v319_v61 = vld [vmem:[%s1319_s7 + $0x88] sm:$0x3]  ;;  %v1471_v19 = vld [vmem:[%s1319_s7 + $0x90] sm:$0xff] }
  0x22   : > { %v1429_v52 = vsel %vm344_vm0, %v354_v40, %v355_v44  ;;  %v361_v55 = vrot.slane %v1413_v48, 1  ;;  %v385_v60 = vrot.slane %v316_v56, 1  ;;  %v313_v62 = vld [vmem:[%s1319_s7 + $0x58] sm:$0x3]  ;;  %v387_v1 = vrot.slane %v319_v61, 1 }
  0x23   : > { %v1419_v50 = vsel %vm344_vm0, %v420_v42, %v421_v46  ;;  %v382_v58 = vsel %vm344_vm0, %v352_v25, %v381_v53  ;;  %v383_v3 = vrot.slane %v313_v62, 1  ;;  %v406_v4 = vrot.slane %v1360_v27, 2  ;;  %v1483_v25 = vld [vmem:[%s1319_s7 + $0xa8] sm:$0xff] }
  0x24   : > { %v362_v59 = vsel %vm344_vm0, %v360_v54, %v361_v55  ;;  %v386_v0 = vsel %vm344_vm0, %v358_v32, %v385_v60  ;;  %v407_v5 = vrot.slane %v316_v56, 2  ;;  %v388_v6 = vsel %vm344_vm0, %v361_v55, %v387_v1 }
  0x25   : > { %474 = vrot.lane.b32.xlu1 %v399_v22, %s1222_s14  ;;  %472 = vrot.lane.b32.xlu0 %v396_v23, %s1222_s14  ;;  %v384_v7 = vsel %vm344_vm0, %v355_v44, %v383_v3  ;;  %v400_v8 = vrot.slane %v1345_v21, 2  ;;  %v401_v9 = vrot.slane %v1407_v45, 2  ;;  %v409_v12 = vrot.slane %v1413_v48, 2  ;;  %v321_v21 = vld [vmem:[%s1319_s7 + $0x98] sm:$0xff] }
  0x26   : > { %v408_v11 = vsel %vm393_vm1, %v406_v4, %v407_v5  ;;  %v410_v14 = vrot.slane %v319_v61, 2  ;;  %v403_v15 = vrot.slane %v1384_v35, 2  ;;  %v404_v16 = vrot.slane %v313_v62, 2 }
  0x27   : > { %v402_v13 = vsel %vm393_vm1, %v400_v8, %v401_v9  ;;  %v363_v22 = vrot.slane %v1471_v19, 1  ;;  %v364_v23 = vrot.slane %v321_v21, 1  ;;  %v366_v27 = vrot.slane %v1483_v25, 1 }
  0x28   : > { %v405_v18 = vsel %vm393_vm1, %v403_v15, %v404_v16  ;;  %v415_v37 = vrot.slane %v1366_v28, 2  ;;  %v416_v38 = vrot.slane %v1369_v29, 2  ;;  %v412_v39 = vrot.slane %v321_v21, 2 }
  0x29   : > { %428 = vrot.lane.b32.xlu1 %v1374_v30, %s1221_s9  ;;  %496 = vrot.lane.b32.xlu0 %v1330_v10, %s1223_s24  ;;  %v365_v24 = vsel %vm344_vm0, %v363_v22, %v364_v23  ;;  %v368_v31 = vsel %vm344_vm0, %v366_v27, %v367_v36 }
  0x2a   : > { %v417_v36 = vsel %vm393_vm1, %v415_v37, %v416_v38 }
  0x2d   : > { %498 = vrot.lane.b32.xlu1 %v1342_v20, %s1223_s24  ;;  %432 = vrot.lane.b32.xlu0 %v1403_v43, %s1221_s9 }
  0x31   : > { %430 = vrot.lane.b32.xlu1 %v1429_v52, %s1221_s9  ;;  %520 = vrot.lane.b32.xlu0 %v1339_v17, %s1224_s11  ;;  %v411_v17 = vsel %vm393_vm1, %v409_v12, %v410_v14 }
  0x35   : > { %452 = vrot.lane.b32.xlu1 %v382_v58, %s1220_s8  ;;  %434 = vrot.lane.b32.xlu0 %v362_v59, %s1221_s9 }
  0x39   : > { %522 = vrot.lane.b32.xlu1 %v1374_v30, %s1224_s11  ;;  %456 = vrot.lane.b32.xlu0 %v386_v0, %s1220_s8  ;;  %v322_v30 = vld [vmem:[%s1319_s7 + $0xa0] sm:$0x3] }
  0x3a   : > { %v389_v32 = vrot.slane %v322_v30, 1  ;;  %v413_v40 = vrot.slane %v322_v30, 2 }
  0x3c   : > { %v390_v35 = vsel %vm344_vm0, %v364_v23, %v389_v32  ;;  %v414_v42 = vsel %vm393_vm1, %v412_v39, %v413_v40  ;;  %vm883_vm0 = vcmask 31744   ;;  %vm887_vm1 = vcmask 130048  }
  0x3d   : > { %458 = vrot.lane.b32.xlu1 %v388_v6, %s1220_s8  ;;  %454 = vrot.lane.b32.xlu0 %v384_v7, %s1220_s8 }
  0x41   : > { %480 = vrot.lane.b32.xlu1 %v408_v11, %s1222_s14  ;;  %476 = vrot.lane.b32.xlu0 %v402_v13, %s1222_s14 }
  0x45   : > { %482 = vrot.lane.b32.xlu1 %v411_v17, %s1222_s14  ;;  %478 = vrot.lane.b32.xlu0 %v405_v18, %s1222_s14 }
  0x49   : > { %504 = vrot.lane.b32.xlu1 %v1410_v47, %s1223_s24  ;;  %500 = vrot.lane.b32.xlu0 %v1379_v33, %s1223_s24 }
  0x4d   : > { %502 = vrot.lane.b32.xlu1 %v1357_v26, %s1223_s24  ;;  %436 = vrot.lane.b32.xlu0 %v365_v24, %s1221_s9 }
  0x51   : > { %524 = vrot.lane.b32.xlu1 %v1429_v52, %s1224_s11  ;;  %506 = vrot.lane.b32.xlu0 %v1471_v19, %s1223_s24 }
  0x55   : > { %438 = vrot.lane.b32.xlu1 %v368_v31, %s1221_s9  ;;  %528 = vrot.lane.b32.xlu0 %v362_v59, %s1224_s11 }
  0x59   : > { %526 = vrot.lane.b32.xlu1 %v1403_v43, %s1224_s11  ;;  %460 = vrot.lane.b32.xlu0 %v390_v35, %s1220_s8 }
  0x5d   : > { %462 = vrot.lane.b32.xlu1 %v1399_v41, %s1220_s8  ;;  %530 = vrot.lane.b32.xlu0 %v365_v24, %s1224_s11 }
  0x61   : > { %486 = vrot.lane.b32.xlu1 %v417_v36, %s1222_s14  ;;  %484 = vrot.lane.b32.xlu0 %v414_v42, %s1222_s14 }
  0x65   : > { %510 = vrot.lane.b32.xlu1 %v1381_v34, %s1223_s24  ;;  %508 = vrot.lane.b32.xlu0 %v1483_v25, %s1223_s24 }
  0x69   : > { %534 = vrot.lane.b32.xlu1 %v1419_v50, %s1224_s11  ;;  %532 = vrot.lane.b32.xlu0 %v368_v31, %s1224_s11  ;;  %s895_s11 = scalar_lea.sflag [#allocation3], %s265_s26 }
  0x8f   : > { %v449_v28 = vpop.permute.xlu1 %448  ;;  %v425_v29 = vpop.permute.xlu0 %424 }
  0x90   : > { %v545_v34 = vsel %vm544_vm3, %v1324_v2, %v425_v29 }
  0x91   : > { %v554_v50 = vsel %vm553_vm4, %v545_v34, %v449_v28 }
  0x93   : > { %v451_v41 = vpop.permute.xlu1 %450  ;;  %v427_v43 = vpop.permute.xlu0 %426 }
  0x94   : > { %v546_v2 = vsel %vm544_vm3, %v1330_v10, %v427_v43 }
  0x95   : > { %v555_v59 = vsel %vm553_vm4, %v546_v2, %v451_v41 }
  0x97   : > { %v475_v44 = vpop.permute.xlu1 %474  ;;  %v473_v45 = vpop.permute.xlu0 %472 }
  0x98   : > { %v563_v52 = vsel %vm562_vm5, %v554_v50, %v473_v45  ;;  %v564_v60 = vsel %vm562_vm5, %v555_v59, %v475_v44 }
  0x9b   : > { %v429_v46 = vpop.permute.xlu1 %428  ;;  %v497_v48 = vpop.permute.xlu0 %496 }
  0x9c   : > { %v572_v53 = vsel %vm571_vm6, %v563_v52, %v497_v48  ;;  %v547_v12 = vsel %vm544_vm3, %v1342_v20, %v429_v46 }
  0x9f   : > { %v499_v49 = vpop.permute.xlu1 %498  ;;  %v433_v51 = vpop.permute.xlu0 %432 }
  0xa0   : > { %v573_v61 = vsel %vm571_vm6, %v564_v60, %v499_v49  ;;  %v549_v18 = vsel %vm544_vm3, %v1357_v26, %v433_v51 }
  0xa3   : > { %v431_v54 = vpop.permute.xlu1 %430  ;;  %v521_v55 = vpop.permute.xlu0 %520 }
  0xa4   : > { %v581_v56 = vsel %vm580_vm7, %v572_v53, %v521_v55  ;;  %v548_v30 = vsel %vm544_vm3, %v1379_v33, %v431_v54 }
  0xa5   : > { %1054 = vmatprep.mubr.msk.f32.mxu0 %vm600_vm8, %v581_v56 }
  0xa7   : > { %v453_v57 = vpop.permute.xlu1 %452  ;;  %v435_v58 = vpop.permute.xlu0 %434 }
  0xa8   : > { %v556_v13 = vsel %vm553_vm4, %v547_v12, %v453_v57  ;;  %v550_v39 = vsel %vm544_vm3, %v1410_v47, %v435_v58 }
  0xab   : > { %v523_v62 = vpop.permute.xlu1 %522  ;;  %v457_v63 = vpop.permute.xlu0 %456 }
  0xac   : > { %v582_v0 = vsel %vm580_vm7, %v573_v61, %v523_v62  ;;  %v558_v22 = vsel %vm553_vm4, %v549_v18, %v457_v63 }
  0xad   : > { %1055 = vmatmul.mubr.msk.f32.vlgmr.msra.gmra.mxu0 %vm600_vm8, %v582_v0 }
  0xaf   : > { %v459_v1 = vpop.permute.xlu1 %458  ;;  %v455_v3 = vpop.permute.xlu0 %454 }
  0xb0   : > { %v557_v32 = vsel %vm553_vm4, %v548_v30, %v455_v3  ;;  %v559_v36 = vsel %vm553_vm4, %v550_v39, %v459_v1 }
  0xb3   : > { %v481_v4 = vpop.permute.xlu1 %480  ;;  %v477_v5 = vpop.permute.xlu0 %476 }
  0xb4   : > { %v565_v14 = vsel %vm562_vm5, %v556_v13, %v477_v5  ;;  %v567_v23 = vsel %vm562_vm5, %v558_v22, %v481_v4 }
  0xb7   : > { %v483_v6 = vpop.permute.xlu1 %482  ;;  %v479_v10 = vpop.permute.xlu0 %478 }
  0xb8   : > { %v566_v26 = vsel %vm562_vm5, %v557_v32, %v479_v10  ;;  %v568_v33 = vsel %vm562_vm5, %v559_v36, %v483_v6 }
  0xbb   : > { %v505_v7 = vpop.permute.xlu1 %504  ;;  %v501_v8 = vpop.permute.xlu0 %500 }
  0xbc   : > { %v574_v15 = vsel %vm571_vm6, %v565_v14, %v501_v8  ;;  %v576_v20 = vsel %vm571_vm6, %v567_v23, %v505_v7 }
  0xbf   : > { %v503_v9 = vpop.permute.xlu1 %502  ;;  %v437_v11 = vpop.permute.xlu0 %436 }
  0xc0   : > { %v575_v35 = vsel %vm571_vm6, %v566_v26, %v503_v9  ;;  %v551_v46 = vsel %vm544_vm3, %v1471_v19, %v437_v11 }
  0xc3   : > { %v525_v16 = vpop.permute.xlu1 %524  ;;  %v507_v17 = vpop.permute.xlu0 %506 }
  0xc4   : > { %v583_v21 = vsel %vm580_vm7, %v574_v15, %v525_v16  ;;  %v577_v42 = vsel %vm571_vm6, %v568_v33, %v507_v17 }
  0xc5   : > { %1057 = vmatprep.mubr.msk.f32.mxu0 %vm600_vm8, %v583_v21 }
  0xc7   : > { %v439_v24 = vpop.permute.xlu1 %438  ;;  %v529_v27 = vpop.permute.xlu0 %528 }
  0xc8   : > { %v585_v31 = vsel %vm580_vm7, %v576_v20, %v529_v27  ;;  %v552_v48 = vsel %vm544_vm3, %v1483_v25, %v439_v24  ;;  %v1578_v25 = vld [vmem:[%s1759_s3] ss:$0 sm:$0xff] }
  0xc9   : > { %1060 = vmatprep.mubr.msk.f32.mxu1 %vm600_vm8, %v585_v31 }
  0xcb   : > { %v527_v37 = vpop.permute.xlu1 %526  ;;  %v461_v38 = vpop.permute.xlu0 %460 }
  0xcc   : > { %v584_v40 = vsel %vm580_vm7, %v575_v35, %v527_v37  ;;  %v560_v34 = vsel %vm553_vm4, %v551_v46, %v461_v38 }
  0xcd   : > { %1058 = vmatmul.mubr.msk.f32.gmra.mxu0 %vm600_vm8, %v584_v40 }
  0xcf   : > { %v463_v28 = vpop.permute.xlu1 %462  ;;  %v531_v29 = vpop.permute.xlu0 %530 }
  0xd0   : > { %v586_v41 = vsel %vm580_vm7, %v577_v42, %v531_v29  ;;  %v561_v49 = vsel %vm553_vm4, %v552_v48, %v463_v28 }
  0xd1   : > { %1061 = vmatmul.mubr.msk.f32.vlgmr.msra.gmra.mxu1 %vm600_vm8, %v586_v41 }
  0xd3   : > { %v487_v43 = vpop.permute.xlu1 %486  ;;  %v485_v44 = vpop.permute.xlu0 %484 }
  0xd4   : > { %v570_v51 = vsel %vm562_vm5, %v561_v49, %v487_v43  ;;  %v569_v50 = vsel %vm562_vm5, %v560_v34, %v485_v44 }
  0xd7   : > { %v511_v45 = vpop.permute.xlu1 %510  ;;  %v509_v47 = vpop.permute.xlu0 %508 }
  0xd8   : > { %v579_v52 = vsel %vm571_vm6, %v570_v51, %v511_v45  ;;  %v578_v53 = vsel %vm571_vm6, %v569_v50, %v509_v47 }
  0xdb   : > { %v535_v54 = vpop.permute.xlu1 %534  ;;  %v533_v55 = vpop.permute.xlu0 %532 }
  0xdc   : > { %v588_v56 = vsel %vm580_vm7, %v579_v52, %v535_v54  ;;  %v587_v19 = vsel %vm580_vm7, %v578_v53, %v533_v55 }
  0xdd   : > { %1063 = vmatprep.mubr.msk.f32.mxu1 %vm600_vm8, %v587_v19 }
  0xde   : > { %1064 = vmatmul.mubr.msk.f32.gmra.mxu1 %vm600_vm8, %v588_v56 }
 0x16d   : > { %v1056_v2 = vpop.f32.mrf.mxu0 }
 0x16e   : > { %v701_v57 = vadd.f32 %v1056_v2, %v1578_v25 }
 0x16f   : > { %v695_v58 = vpop.f32.mrf.mxu0 }
 0x170   : > { %v696_v59 = vadd.f32 %v1578_v25, %v695_v58  ;;  %v742_v60 = vrot.slane %v701_v57, 7  ;;  %v782_v7 = vrot.slane %v701_v57, 1  ;;  %v816_v8 = vrot.slane %v701_v57, 3 }
 0x171   : > { %v799_v14 = vrot.slane %v701_v57, 2  ;;  %v850_v15 = vrot.slane %v701_v57, 5  ;;  %v833_v21 = vrot.slane %v701_v57, 4  ;;  %v867_v22 = vrot.slane %v701_v57, 6 }
 0x172   : > { %v1583_v61 = vsel %vm743_vm9, %v742_v60, %v696_v59  ;;  %v781_v1 = vrot.slane %v696_v59, 2  ;;  %v764_v3 = vrot.slane %v696_v59, 1  ;;  %v815_v5 = vrot.slane %v696_v59, 4 }
 0x173   : > { %v798_v6 = vrot.slane %v696_v59, 3  ;;  %v849_v10 = vrot.slane %v696_v59, 6  ;;  %v832_v11 = vrot.slane %v696_v59, 5  ;;  %v866_v16 = vrot.slane %v696_v59, 7 }
 0x174   : > { %v783_v17 = vsel %vm743_vm9, %v782_v7, %v781_v1  ;;  %v765_v18 = vsel %vm743_vm9, %v701_v57, %v764_v3  ;;  %v817_v20 = vsel %vm743_vm9, %v816_v8, %v815_v5 }
 0x175   : > { %v800_v24 = vsel %vm743_vm9, %v799_v14, %v798_v6  ;;  %v851_v27 = vsel %vm743_vm9, %v850_v15, %v849_v10  ;;  %v834_v26 = vsel %vm743_vm9, %v833_v21, %v832_v11  ;;  %v1610_v39 = vsel %vm743_vm9, %v867_v22, %v866_v16 }
 0x18d   : > { %v1059_v62 = vpop.f32.mrf.mxu0 }
 0x18e   : > { %v1590_v12 = vadd.f32 %v1059_v62, %v1578_v25 }
 0x18f   : > { %v705_v63 = vpop.f32.mrf.mxu0 }
 0x190   : > { %v1586_v0 = vadd.f32 %v1578_v25, %v705_v63  ;;  %v785_v37 = vrot.slane %v1590_v12, 7  ;;  %v820_v38 = vrot.slane %v1590_v12, 1  ;;  %v768_v36 = vrot.slane %v1590_v12, 6 }
 0x191   : > { %v1062_v4 = vpop.f32.mrf.mxu1  ;;  %v854_v42 = vrot.slane %v1590_v12, 3  ;;  %v837_v41 = vrot.slane %v1590_v12, 2  ;;  %v871_v43 = vrot.slane %v1590_v12, 4  ;;  %v748_v51 = vrot.slane %v1590_v12, 5 }
 0x192   : > { %v818_v9 = vrot.slane %v1586_v0, 2  ;;  %v766_v23 = vrot.slane %v1586_v0, 7  ;;  %v801_v32 = vrot.slane %v1586_v0, 1  ;;  %v1605_v35 = vadd.f32 %v1062_v4, %v1578_v25 }
 0x193   : > { %v715_v13 = vpop.f32.mrf.mxu1  ;;  %v784_v40 = vsel %vm746_vm10, %v1586_v0, %v783_v17  ;;  %v852_v33 = vrot.slane %v1586_v0, 4  ;;  %v835_v49 = vrot.slane %v1586_v0, 3  ;;  %v745_v54 = vrot.slane %v1586_v0, 6 }
 0x194   : > { %v1599_v30 = vadd.f32 %v1578_v25, %v715_v13  ;;  %v819_v31 = vsel %vm746_vm10, %v818_v9, %v817_v20  ;;  %v767_v28 = vsel %vm746_vm10, %v766_v23, %v765_v18  ;;  %v802_v47 = vsel %vm746_vm10, %v801_v32, %v800_v24 }
 0x195   : > { %v821_v29 = vsel %vm749_vm11, %v820_v38, %v819_v31  ;;  %v786_v48 = vsel %vm749_vm11, %v785_v37, %v784_v40  ;;  %v823_v34 = vrot.slane %v1605_v35, 7  ;;  %v789_v50 = vrot.slane %v1605_v35, 5 }
 0x196   : > { %v787_v44 = vrot.slane %v1599_v30, 6  ;;  %v770_v45 = vrot.slane %v1599_v30, 5  ;;  %v804_v46 = vrot.slane %v1599_v30, 7  ;;  %v822_v52 = vsel %vm752_vm12, %v1599_v30, %v821_v29 }
 0x197   : > { %v853_v53 = vsel %vm746_vm10, %v852_v33, %v851_v27  ;;  %v769_v55 = vsel %vm749_vm11, %v768_v36, %v767_v28  ;;  %v772_v56 = vrot.slane %v1605_v35, 4  ;;  %v803_v19 = vsel %vm749_vm11, %v1590_v12, %v802_v47 }
 0x198   : > { %v751_v2 = vrot.slane %v1599_v30, 4  ;;  %v788_v58 = vsel %vm752_vm12, %v787_v44, %v786_v48  ;;  %v771_v59 = vsel %vm752_vm12, %v770_v45, %v769_v55  ;;  %v805_v60 = vsel %vm752_vm12, %v804_v46, %v803_v19 }
 0x199   : > { %v747_v62 = vsel %vm746_vm10, %v745_v54, %v1583_v61  ;;  %v824_v63 = vsel %vm755_vm13, %v823_v34, %v822_v52  ;;  %v806_v1 = vrot.slane %v1605_v35, 6  ;;  %v855_v3 = vsel %vm749_vm11, %v854_v42, %v853_v53 }
 0x19a   : > { %v750_v4 = vsel %vm749_vm11, %v748_v51, %v747_v62  ;;  %v856_v10 = vrot.slane %v1599_v30, 2  ;;  %v754_v8 = vrot.slane %v1605_v35, 3  ;;  %v790_v9 = vsel %vm755_vm13, %v789_v50, %v788_v58 }
 0x19b   : > { %v753_v7 = vsel %vm752_vm12, %v751_v2, %v750_v4  ;;  %v773_v11 = vsel %vm755_vm13, %v772_v56, %v771_v59  ;;  %v807_v13 = vsel %vm755_vm13, %v806_v1, %v805_v60  ;;  %v836_v14 = vsel %vm746_vm10, %v835_v49, %v834_v26 }
 0x19c   : > { %v839_v15 = vrot.slane %v1599_v30, 1  ;;  %v869_v16 = vrot.slane %v1586_v0, 5  ;;  %v756_v17 = vsel %vm755_vm13, %v754_v8, %v753_v7  ;;  %v857_v24 = vsel %vm752_vm12, %v856_v10, %v855_v3 }
 0x19d   : > { %v858_v27 = vrot.slane %v1605_v35, 1  ;;  %v838_v0 = vsel %vm749_vm11, %v837_v41, %v836_v14  ;;  %v873_v26 = vrot.slane %v1599_v30, 3  ;;  %v875_v54 = vrot.slane %v1605_v35, 2 }
 0x19e   : > { %v1065_v57 = vpop.f32.mrf.mxu1  ;;  %v840_v40 = vsel %vm752_vm12, %v839_v15, %v838_v0  ;;  %v870_v36 = vsel %vm746_vm10, %v869_v16, %v1610_v39 }
 0x19f   : > { %v1649_v5 = vadd.f32 %v1065_v57, %v1578_v25  ;;  %v859_v45 = vsel %vm755_vm13, %v858_v27, %v857_v24  ;;  %v841_v39 = vsel %vm755_vm13, %v1605_v35, %v840_v40  ;;  %v872_v47 = vsel %vm749_vm11, %v871_v43, %v870_v36 }
 0x1a0   : > { %v725_v6 = vpop.f32.mrf.mxu1  ;;  %v874_v43 = vsel %vm752_vm12, %v873_v26, %v872_v47 }
 0x1a1   : > { %v726_v61 = vadd.f32 %v1578_v25, %v725_v6  ;;  %v793_v25 = vrot.slane %v1649_v5, 3  ;;  %v776_v20 = vrot.slane %v1649_v5, 2  ;;  %v827_v30 = vrot.slane %v1649_v5, 5 }
 0x1a2   : > { %v810_v41 = vrot.slane %v1649_v5, 4  ;;  %v760_v44 = vrot.slane %v1649_v5, 1  ;;  %v861_v49 = vrot.slane %v1649_v5, 7  ;;  %v844_v53 = vrot.slane %v1649_v5, 6 }
 0x1a3   : > { %v791_v18 = vrot.slane %v726_v61, 4  ;;  %v774_v21 = vrot.slane %v726_v61, 3  ;;  %v825_v22 = vrot.slane %v726_v61, 6  ;;  %v808_v23 = vrot.slane %v726_v61, 5 }
 0x1a4   : > { %v842_v28 = vrot.slane %v726_v61, 7  ;;  %v757_v29 = vrot.slane %v726_v61, 2  ;;  %v860_v50 = vsel %vm758_vm14, %v726_v61, %v859_v45  ;;  %v877_v52 = vrot.slane %v726_v61, 1 }
 0x1a5   : > { %v792_v31 = vsel %vm758_vm14, %v791_v18, %v790_v9  ;;  %v775_v32 = vsel %vm758_vm14, %v774_v21, %v773_v11  ;;  %v826_v33 = vsel %vm758_vm14, %v825_v22, %v824_v63  ;;  %v809_v42 = vsel %vm758_vm14, %v808_v23, %v807_v13 }
 0x1a6   : > { %v794_v37 = vsel %vm761_vm15, %v793_v25, %v792_v31  ;;  %v777_v38 = vsel %vm761_vm15, %v776_v20, %v775_v32  ;;  %v759_v46 = vsel %vm758_vm14, %v757_v29, %v756_v17  ;;  %v828_v48 = vsel %vm761_vm15, %v827_v30, %v826_v33 }
 0x1a7   : > { %795 = vrot.lane.b32.xlu1 %v794_v37, %s1221_s9  ;;  %778 = vrot.lane.b32.xlu0 %v777_v38, %s1225_s22  ;;  %v811_v34 = vsel %vm761_vm15, %v810_v41, %v809_v42  ;;  %v762_v51 = vsel %vm761_vm15, %v760_v44, %v759_v46  ;;  %s1226_s9 = smov 16   ;;  %v843_v12 = vsel %vm758_vm14, %v842_v28, %v841_v39 }
 0x1a8   : > { %v862_v55 = vsel %vm761_vm15, %v861_v49, %v860_v50  ;;  %v845_v56 = vsel %vm761_vm15, %v844_v53, %v843_v12  ;;  %v876_v19 = vsel %vm755_vm13, %v875_v54, %v874_v43 }
 0x1a9   : > { %v878_v2 = vsel %vm758_vm14, %v877_v52, %v876_v19 }
 0x1aa   : > { %v879_v57 = vsel %vm761_vm15, %v1649_v5, %v878_v2 }
 0x1ab   : > { %829 = vrot.lane.b32.xlu1 %v828_v48, %s1226_s9  ;;  %812 = vrot.lane.b32.xlu0 %v811_v34, %s1220_s8  ;;  %s1227_s8 = smov 28  }
 0x1af   : > { %863 = vrot.lane.b32.xlu1 %v862_v55, %s1223_s24  ;;  %846 = vrot.lane.b32.xlu0 %v845_v56, %s1222_s14  ;;  %s1026_s14 = sshll.u32 %s1210_s18, 7  ;;  %s267_s24 = scalar_lea.vmem [#allocation2], %s1012_s29 }
 0x1b0   : > { %s909_s30 = sshll.u32 %s267_s24, 4  ;;  %s1715_s10 = scalar_lea.hbm %s1760_s4, %s1026_s14  ;;  %s910_s30 = int_to_ptr.vmem [resolvable:$true] %s909_s30 }
 0x1b1   : > { %s1142_s12 = scalar_lea.vmem %s910_s30, 128  ;;  %s1228_s18 = smov [#allocation2]  }
 0x1b2   : > { %p1143_p12 = scmp.ne.s32.totalorder %s910_s30, %s1142_s12  ;;  %s1146_s13 = sshll.u32 %s1228_s18, 4  ;;  %s1147_s13 = int_to_ptr.vmem [resolvable:$false] %s1146_s13 }
 0x1b3   : > { %880 = vrot.lane.b32.xlu0 %v879_v57, %s1227_s8  ;;  %s1148_s7 = scalar_lea.vmem %s1147_s13, 256  ;;  %p1149_p1 = scmp.lt.s32.totalorder %s910_s30, %s1147_s13 }
 0x1b4   : > { %p1144_p13 = pnand %p1143_p12, %p1294_p4  ;;  %p1150_p2 = scmp.lt.s32.totalorder %s1148_s7, %s1142_s12 }
 0x1b6   : > { %p1145_p0 = pneg %p1144_p13  ;;  %p1151_p3 = por %p1150_p2, %p1149_p1 }
 0x1b8   : > { %p1152_p5 = pnand %p1151_p3, %p1145_p0 }
 0x219   : > { %v796_v35 = vpop.permute.xlu1 %795  ;;  %v779_v58 = vpop.permute.xlu0 %778 }
 0x21a   : > { %v884_v59 = vsel %vm883_vm0, %v762_v51, %v779_v58 }
 0x21b   : > { %v885_v63 = vsel %vm544_vm3, %v884_v59, %v796_v35 }
 0x21d   : > { %v830_v60 = vpop.permute.xlu1 %829  ;;  %v813_v62 = vpop.permute.xlu0 %812 }
 0x21e   : > { %v886_v1 = vsel %vm553_vm4, %v885_v63, %v813_v62 }
 0x21f   : > { %v888_v4 = vsel %vm887_vm1, %v886_v1, %v830_v60 }
 0x221   : > { %v847_v3 = vpop.permute.xlu0 %846  ;;  %v864_v5 = vpop.permute.xlu1 %863 }
 0x222   : > { %v889_v6 = vsel %vm562_vm5, %v888_v4, %v847_v3 }
 0x223   : > { %v890_v7 = vsel %vm571_vm6, %v889_v6, %v864_v5 }
 0x225   : > { %v881_v10 = vpop.permute.xlu0 %880 }
 0x226   : > { %v892_v8 = vsel %vm891_vm2, %v890_v7, %v881_v10 }
 0x227   : > { %893 = vst.msk [vmem:[%s267_s24] sm:$0xff] %vm580_vm7, %v892_v8 }
 0x228   : > { %1155 = shalt.err (!%p1152_p5)
}
 0x229   : > { %s1156_s21 = scalar_lea.hbm %s1715_s10, 128  ;;  %s1160_s8 = scalar_lea.hbm %s1760_s4, 256 }
 0x22a   : > { %p1157_p6 = scmp.ne.s32.totalorder %s1715_s10, %s1156_s21  ;;  %p1161_p10 = scmp.lt.s32.totalorder %s1715_s10, %s1760_s4 }
 0x22b   : > { %p1162_p11 = scmp.lt.s32.totalorder %s1160_s8, %s1156_s21 }
 0x22c   : > { %p1158_p7 = pnand %p1157_p6, %p1294_p4 }
 0x22d   : > { %p1163_p12 = por %p1162_p11, %p1161_p10 }
 0x22e   : > { %p1159_p9 = pneg %p1158_p7 }
 0x230   : > { %p1164_p13 = pnand %p1163_p12, %p1159_p9 }
 0x232   : > { %1167 = shalt.err (!%p1164_p13)
}
 0x233   : > { %1078 = dma.vmem_to_hbm [thread:$0]  (%p1294_p4), %s910_s30, 128, %s1715_s10, %s895_s11  }
 0x234 PF: > { %p1085_p0 = scmp.ge.s32.totalorder %s1218_s20, 2  ;;  %s921_s14 = sand.u32 1, %s1198_s15  }
 0x235   : > { %s922_s24 = scalar_lea.sflag [#allocation3], %s921_s14 }
 0x236   : > { %p1081_p1 = pnand %p1085_p0, %p1301_p8 }
 0x238   : > { %p1082_p2 = pneg %p1081_p1 }
 0x23a   : > { %1193 = dma.done.wait (%p1082_p2), %s922_s24, 128  }
 0x23b   : > { %1195 = vsyncadd (%p1082_p2), %s922_s24, 4294967168  ;;  %s17_s20 = sadd.s32 1, %s1218_s20   ;;  %s1763_s15 = smov %s1202_s16 }
 0x23c   : > { %p14_p3 = scmp.ge.s32.totalorder %s17_s20, 4   ;;  %s1764_s16 = smov %s1206_s17 }
 0x23d   : > { %s1765_s17 = smov %s1307_s28  ;;  %s1766_s18 = smov %s1214_s19 }
 0x23e   : > { %s1767_s19 = smov %s1769_s23  ;;  %16 = sbr.rel (!%p14_p3) target bundleno = 4 (0x4), region = 74 }
 0x243   :  { %927 = vsyncpa [#allocation3], 1 }
 0x244   :  { %929 = vsyncpa [#allocation3 + $0x1], 1 }

// kernel: tpu_custom_call.1
= control target key start
LH: loop header
LB: loop body
LE: loop exit
PB: predicated region body
PF: predicated region fallthrough
CT: control target
= control target key end

     0   :  { %9 = vsyncpa [#allocation3], 0  ;;  %s1756_s0 = inlined_call_operand.vmem [shape: f32[2,9,18,8], index: 0, kind: input, shape index: {}]   ;;  %s1757_s1 = inlined_call_operand.vmem [shape: f32[2,9,18,8], index: 1, kind: input, shape index: {}]   ;;  %s1758_s2 = inlined_call_operand.vmem [shape: f32[36,4], index: 2, kind: input, shape index: {}]   ;;  %s1759_s3 = inlined_call_operand.vmem [shape: f32[1,4], index: 3, kind: input, shape index: {}]   ;;  %s1760_s4 = inlined_call_operand.hbm [shape: f32[2,8,32], index: 4, kind: output, shape index: {}]  }
   0x1   :  { %11 = vsyncpa [#allocation3 + $0x1], 0  ;;  %s1254_s15 = smov 0   ;;  %s1256_s16 = smov 0  }
   0x2   :  { %s1258_s17 = smov 0   ;;  %s1260_s18 = smov 0  }
   0x3   :  { %s1262_s19 = smov 0   ;;  %s1264_s20 = smov 0  }
   0x4 LB: > { %s1007_s21 = sadd.s32 4294967295, %s1218_s20   ;;  %s1008_s22 = sadd.s32 4294967294, %s1218_s20   ;;  %s1218_s20 = sphi %s1264_s20, %s17_s20   ;;  %s1214_s19 = sphi %s1262_s19, %s1767_s19   ;;  %s1210_s18 = sphi %s1260_s18, %s1766_s18   ;;  %s1206_s17 = sphi %s1258_s17, %s1765_s17   ;;  %s1202_s16 = sphi %s1256_s16, %s1764_s16   ;;  %s1198_s15 = sphi %s1254_s15, %s1763_s15  }
   0x5   : > { %s29_s23 = sadd.s32 1, %s1214_s19  ;;  %s140_s24 = sadd.s32 1, %s1206_s17 }
   0x6   : > { %p31_p0 = scmp.ge.s32.totalorder %s29_s23, 2  ;;  %p150_p1 = scmp.ne.s32.totalorder %s1206_s17, %s1202_s16 }
   0x7   : > { %p151_p2 = scmp.eq.s32.totalorder %s1007_s21, 1  ;;  %p156_p3 = scmp.ne.s32.totalorder %s1202_s16, %s1198_s15 }
   0x8   : > { %s1769_s23 = smov (%p31_p0, %s29_s23), 0  ;;  %p157_p5 = scmp.eq.s32.totalorder %s1008_s22, 1 }
   0x9   : > { %p1294_p4 = por %p151_p2, %p150_p1  ;;  %s135_s26 = ssub.s32 %s1214_s19, %s1769_s23 }
   0xa   : > { %p1011_p6 = scmp.ge.s32.totalorder %s1218_s20, 1  ;;  %p138_p7 = scmp.eq.s32.totalorder %s135_s26, 0 }
   0xb   : > { %p1301_p8 = por %p157_p5, %p156_p3  ;;  %p221_p9 = scmp.lt.s32.totalorder %s1218_s20, 3 }
   0xc   : > { %s1307_s28 = scalar_select %p138_p7, %s1206_s17, %s140_s24  }
   0xd   : > { %p222_p10 = pnand %p1011_p6, %p221_p9 }
   0xe   : > { %p274_p11 = scmp.lt.s32.totalorder (!%p222_p10), %s1210_s18, 1  ;;  %s1220_s8 = smov (!%p222_p10), 12  }
   0xf   : > { %225 = sbr.rel (%p222_p10) target bundleno = 564 (0x234), region = 36  ;;  %s1221_s9 = smov (!%p222_p10), 8  }
  0x10   : > { %s1222_s14 = smov (!%p222_p10), 20   ;;  %s1223_s24 = smov (!%p222_p10), 24  }
  0x11   : > { %s1224_s11 = smov (!%p222_p10), 32   ;;  %s1225_s22 = smov (!%p222_p10), 4  }
  0x12   : > { %s265_s26 = sand.u32 (!%p222_p10), 1, %s1202_s16  }
  0x14   : > { %s1311_s29 = scalar_select %p274_p11, %s1210_s18, 1  ;;  %vm344_vm0 = vcmask 1046528   ;;  %vm393_vm1 = vcmask 1045504   ;;  %v593_v39 = vld [vmem:[%s1758_s2 + $0x20] sm:$0xf]  ;;  %vm625_vm2 = vcmask 1043456  }
  0x15   : > { %1044 = vmatprep.subr.msk.mxu0 %vm625_vm2, %v593_v39  ;;  %v592_v49 = vld [vmem:[%s1758_s2 + $0x18] sm:$0xff]  ;;  %1066 = vmatprep.subr.msk.mxu1 %vm625_vm2, %v593_v39  ;;  %v591_v51 = vld [vmem:[%s1758_s2 + $0x10] sm:$0xff]  ;;  %v590_v57 = vld [vmem:[%s1758_s2 + $0x8] sm:$0xff]  ;;  %vm544_vm3 = vcmask 64512   ;;  %vm553_vm4 = vcmask 97280   ;;  %vm562_vm5 = vcmask 162816  }
  0x16   : > { %s1076_s30 = smul.u32 216, %s1311_s29  ;;  %1045 = vmatpush3.msk.msra.mxu0 %vm625_vm2, %v593_v39  ;;  %1071 = vmatpush3.msk.msra.mxu1 %vm625_vm2, %v593_v39  ;;  %v589_v63 = vld [vmem:[%s1758_s2] sm:$0xff]  ;;  %vm571_vm6 = vcmask 195584   ;;  %vm580_vm7 = vcmask 261120   ;;  %vm600_vm8 = vcmask 293888   ;;  %vm743_vm9 = vcmask 1041409  }
  0x17   : > { %1046 = vmatprep.subr.mxu0 %v592_v49  ;;  %1067 = vmatprep.subr.mxu1 %v592_v49  ;;  %vm746_vm10 = vcmask 1042434   ;;  %vm749_vm11 = vcmask 1043459   ;;  %vm752_vm12 = vcmask 1044484   ;;  %vm755_vm13 = vcmask 1045509   ;;  %s1012_s29 = sshll.u32 %s265_s26, 3 }
  0x18   : > { %s1319_s7 = scalar_lea.vmem %s1756_s0, %s1076_s30  ;;  %s1030_s10 = sadd.s32 192, %s1076_s30  ;;  %1047 = vmatpush3.msra.mxu0 %v592_v49  ;;  %1072 = vmatpush3.msra.mxu1 %v592_v49  ;;  %vm758_vm14 = vcmask 1046534   ;;  %vm761_vm15 = vcmask 1047559   ;;  %vm891_vm2 = vcmask 228352  }
  0x19   : > { %v303_v0 = vld [vmem:[%s1319_s7 + $0x8] sm:$0xff]  ;;  %v304_v1 = vld [vmem:[%s1319_s7 + $0x10] sm:$0x3]  ;;  %v1324_v2 = vld [vmem:[%s1319_s7] sm:$0xff]  ;;  %s299_s13 = scalar_lea.vmem %s1757_s1, %s1030_s10  ;;  %1048 = vmatprep.subr.mxu0 %v591_v51  ;;  %1068 = vmatprep.subr.mxu1 %v591_v51 }
  0x1a   : > { %v346_v3 = vrot.slane %v303_v0, 1  ;;  %v377_v4 = vrot.slane %v304_v1, 1  ;;  %v345_v5 = vrot.slane %v1324_v2, 1  ;;  %v306_v6 = vld [vmem:[%s1319_s7 + $0x20] sm:$0xff]  ;;  %v307_v7 = vld [vmem:[%s1319_s7 + $0x28] sm:$0x3]  ;;  %1049 = vmatpush3.msra.mxu0 %v591_v51  ;;  %1073 = vmatpush3.msra.mxu1 %v591_v51 }
  0x1b   : > { %v349_v8 = vrot.slane %v306_v6, 1  ;;  %v379_v9 = vrot.slane %v307_v7, 1  ;;  %v1330_v10 = vld [vmem:[%s1319_s7 + $0x18] sm:$0xff]  ;;  %v397_v14 = vrot.slane %v306_v6, 2  ;;  %v398_v15 = vrot.slane %v307_v7, 2  ;;  %v1342_v20 = vld [vmem:[%s1319_s7 + $0x30] sm:$0xff]  ;;  %1050 = vmatprep.subr.mxu0 %v590_v57  ;;  %1069 = vmatprep.subr.mxu1 %v590_v57 }
  0x1c   : > { %v378_v11 = vsel %vm344_vm0, %v346_v3, %v377_v4  ;;  %v347_v12 = vsel %vm344_vm0, %v345_v5, %v346_v3  ;;  %v348_v13 = vrot.slane %v1330_v10, 1  ;;  %v394_v18 = vrot.slane %v303_v0, 2  ;;  %v1345_v21 = vld [vmem:[%s1319_s7 + $0x38] sm:$0xff]  ;;  %v1357_v26 = vld [vmem:[%s1319_s7 + $0x60] sm:$0xff]  ;;  %v1360_v27 = vld [vmem:[%s1319_s7 + $0x68] sm:$0xff]  ;;  %1051 = vmatpush3.msra.mxu0 %v590_v57  ;;  %1074 = vmatpush3.msra.mxu1 %v590_v57 }
  0x1d   : > { %448 = vrot.lane.b32.xlu1 %v378_v11, %s1220_s8  ;;  %424 = vrot.lane.b32.xlu0 %v347_v12, %s1221_s9  ;;  %v380_v16 = vsel %vm344_vm0, %v349_v8, %v379_v9  ;;  %v395_v19 = vrot.slane %v304_v1, 2  ;;  %v399_v22 = vsel %vm393_vm1, %v397_v14, %v398_v15  ;;  %v351_v24 = vrot.slane %v1342_v20, 1  ;;  %v1366_v28 = vld [vmem:[%s1319_s7 + $0xb0] sm:$0xff]  ;;  %v1369_v29 = vld [vmem:[%s1319_s7 + $0xb8] sm:$0x3] }
  0x1e   : > { %v1339_v17 = vsel %vm344_vm0, %v348_v13, %v349_v8  ;;  %v352_v25 = vrot.slane %v1345_v21, 1  ;;  %v357_v31 = vrot.slane %v1357_v26, 1  ;;  %v358_v32 = vrot.slane %v1360_v27, 1  ;;  %v1379_v33 = vld [vmem:[%s1319_s7 + $0x48] sm:$0xff]  ;;  %v1381_v34 = vld [vmem:[%s299_s13] sm:$0xff]  ;;  %v1384_v35 = vld [vmem:[%s1319_s7 + $0x50] sm:$0xff]  ;;  %1052 = vmatprep.subr.mxu0 %v589_v63  ;;  %1070 = vmatprep.subr.mxu1 %v589_v63 }
  0x1f   : > { %v396_v23 = vsel %vm393_vm1, %v394_v18, %v395_v19  ;;  %v367_v36 = vrot.slane %v1366_v28, 1  ;;  %v391_v37 = vrot.slane %v1369_v29, 1  ;;  %v327_v38 = vld [vmem:[%s299_s13 + $0x8] sm:$0xff]  ;;  %v354_v40 = vrot.slane %v1379_v33, 1  ;;  %v1407_v45 = vld [vmem:[%s1319_s7 + $0x40] sm:$0x3]  ;;  %1053 = vmatpush3.msra.mxu0 %v589_v63  ;;  %1075 = vmatpush3.msra.mxu1 %v589_v63 }
  0x20   : > { %v1374_v30 = vsel %vm344_vm0, %v351_v24, %v352_v25  ;;  %v420_v42 = vrot.slane %v1381_v34, 1  ;;  %v1403_v43 = vsel %vm344_vm0, %v357_v31, %v358_v32  ;;  %v355_v44 = vrot.slane %v1384_v35, 1  ;;  %v1410_v47 = vld [vmem:[%s1319_s7 + $0x78] sm:$0xff]  ;;  %v1413_v48 = vld [vmem:[%s1319_s7 + $0x80] sm:$0xff]  ;;  %v316_v56 = vld [vmem:[%s1319_s7 + $0x70] sm:$0x3] }
  0x21   : > { %450 = vrot.lane.b32.xlu1 %v380_v16, %s1220_s8  ;;  %426 = vrot.lane.b32.xlu0 %v1339_v17, %s1221_s9  ;;  %v1399_v41 = vsel %vm344_vm0, %v367_v36, %v391_v37  ;;  %v421_v46 = vrot.slane %v327_v38, 1  ;;  %v381_v53 = vrot.slane %v1407_v45, 1  ;;  %v360_v54 = vrot.slane %v1410_v47, 1  ;;  %v319_v61 = vld [vmem:[%s1319_s7 + $0x88] sm:$0x3]  ;;  %v1471_v19 = vld [vmem:[%s1319_s7 + $0x90] sm:$0xff] }
  0x22   : > { %v1429_v52 = vsel %vm344_vm0, %v354_v40, %v355_v44  ;;  %v361_v55 = vrot.slane %v1413_v48, 1  ;;  %v385_v60 = vrot.slane %v316_v56, 1  ;;  %v313_v62 = vld [vmem:[%s1319_s7 + $0x58] sm:$0x3]  ;;  %v387_v1 = vrot.slane %v319_v61, 1 }
  0x23   : > { %v1419_v50 = vsel %vm344_vm0, %v420_v42, %v421_v46  ;;  %v382_v58 = vsel %vm344_vm0, %v352_v25, %v381_v53  ;;  %v383_v3 = vrot.slane %v313_v62, 1  ;;  %v406_v4 = vrot.slane %v1360_v27, 2  ;;  %v1483_v25 = vld [vmem:[%s1319_s7 + $0xa8] sm:$0xff] }
  0x24   : > { %v362_v59 = vsel %vm344_vm0, %v360_v54, %v361_v55  ;;  %v386_v0 = vsel %vm344_vm0, %v358_v32, %v385_v60  ;;  %v407_v5 = vrot.slane %v316_v56, 2  ;;  %v388_v6 = vsel %vm344_vm0, %v361_v55, %v387_v1 }
  0x25   : > { %474 = vrot.lane.b32.xlu1 %v399_v22, %s1222_s14  ;;  %472 = vrot.lane.b32.xlu0 %v396_v23, %s1222_s14  ;;  %v384_v7 = vsel %vm344_vm0, %v355_v44, %v383_v3  ;;  %v400_v8 = vrot.slane %v1345_v21, 2  ;;  %v401_v9 = vrot.slane %v1407_v45, 2  ;;  %v409_v12 = vrot.slane %v1413_v48, 2  ;;  %v321_v21 = vld [vmem:[%s1319_s7 + $0x98] sm:$0xff] }
  0x26   : > { %v408_v11 = vsel %vm393_vm1, %v406_v4, %v407_v5  ;;  %v410_v14 = vrot.slane %v319_v61, 2  ;;  %v403_v15 = vrot.slane %v1384_v35, 2  ;;  %v404_v16 = vrot.slane %v313_v62, 2 }
  0x27   : > { %v402_v13 = vsel %vm393_vm1, %v400_v8, %v401_v9  ;;  %v363_v22 = vrot.slane %v1471_v19, 1  ;;  %v364_v23 = vrot.slane %v321_v21, 1  ;;  %v366_v27 = vrot.slane %v1483_v25, 1 }
  0x28   : > { %v405_v18 = vsel %vm393_vm1, %v403_v15, %v404_v16  ;;  %v415_v37 = vrot.slane %v1366_v28, 2  ;;  %v416_v38 = vrot.slane %v1369_v29, 2  ;;  %v412_v39 = vrot.slane %v321_v21, 2 }
  0x29   : > { %428 = vrot.lane.b32.xlu1 %v1374_v30, %s1221_s9  ;;  %496 = vrot.lane.b32.xlu0 %v1330_v10, %s1223_s24  ;;  %v365_v24 = vsel %vm344_vm0, %v363_v22, %v364_v23  ;;  %v368_v31 = vsel %vm344_vm0, %v366_v27, %v367_v36 }
  0x2a   : > { %v417_v36 = vsel %vm393_vm1, %v415_v37, %v416_v38 }
  0x2d   : > { %498 = vrot.lane.b32.xlu1 %v1342_v20, %s1223_s24  ;;  %432 = vrot.lane.b32.xlu0 %v1403_v43, %s1221_s9 }
  0x31   : > { %430 = vrot.lane.b32.xlu1 %v1429_v52, %s1221_s9  ;;  %520 = vrot.lane.b32.xlu0 %v1339_v17, %s1224_s11  ;;  %v411_v17 = vsel %vm393_vm1, %v409_v12, %v410_v14 }
  0x35   : > { %452 = vrot.lane.b32.xlu1 %v382_v58, %s1220_s8  ;;  %434 = vrot.lane.b32.xlu0 %v362_v59, %s1221_s9 }
  0x39   : > { %522 = vrot.lane.b32.xlu1 %v1374_v30, %s1224_s11  ;;  %456 = vrot.lane.b32.xlu0 %v386_v0, %s1220_s8  ;;  %v322_v30 = vld [vmem:[%s1319_s7 + $0xa0] sm:$0x3] }
  0x3a   : > { %v389_v32 = vrot.slane %v322_v30, 1  ;;  %v413_v40 = vrot.slane %v322_v30, 2 }
  0x3c   : > { %v390_v35 = vsel %vm344_vm0, %v364_v23, %v389_v32  ;;  %v414_v42 = vsel %vm393_vm1, %v412_v39, %v413_v40  ;;  %vm883_vm0 = vcmask 31744   ;;  %vm887_vm1 = vcmask 130048  }
  0x3d   : > { %458 = vrot.lane.b32.xlu1 %v388_v6, %s1220_s8  ;;  %454 = vrot.lane.b32.xlu0 %v384_v7, %s1220_s8 }
  0x41   : > { %480 = vrot.lane.b32.xlu1 %v408_v11, %s1222_s14  ;;  %476 = vrot.lane.b32.xlu0 %v402_v13, %s1222_s14 }
  0x45   : > { %482 = vrot.lane.b32.xlu1 %v411_v17, %s1222_s14  ;;  %478 = vrot.lane.b32.xlu0 %v405_v18, %s1222_s14 }
  0x49   : > { %504 = vrot.lane.b32.xlu1 %v1410_v47, %s1223_s24  ;;  %500 = vrot.lane.b32.xlu0 %v1379_v33, %s1223_s24 }
  0x4d   : > { %502 = vrot.lane.b32.xlu1 %v1357_v26, %s1223_s24  ;;  %436 = vrot.lane.b32.xlu0 %v365_v24, %s1221_s9 }
  0x51   : > { %524 = vrot.lane.b32.xlu1 %v1429_v52, %s1224_s11  ;;  %506 = vrot.lane.b32.xlu0 %v1471_v19, %s1223_s24 }
  0x55   : > { %438 = vrot.lane.b32.xlu1 %v368_v31, %s1221_s9  ;;  %528 = vrot.lane.b32.xlu0 %v362_v59, %s1224_s11 }
  0x59   : > { %526 = vrot.lane.b32.xlu1 %v1403_v43, %s1224_s11  ;;  %460 = vrot.lane.b32.xlu0 %v390_v35, %s1220_s8 }
  0x5d   : > { %462 = vrot.lane.b32.xlu1 %v1399_v41, %s1220_s8  ;;  %530 = vrot.lane.b32.xlu0 %v365_v24, %s1224_s11 }
  0x61   : > { %486 = vrot.lane.b32.xlu1 %v417_v36, %s1222_s14  ;;  %484 = vrot.lane.b32.xlu0 %v414_v42, %s1222_s14 }
  0x65   : > { %510 = vrot.lane.b32.xlu1 %v1381_v34, %s1223_s24  ;;  %508 = vrot.lane.b32.xlu0 %v1483_v25, %s1223_s24 }
  0x69   : > { %534 = vrot.lane.b32.xlu1 %v1419_v50, %s1224_s11  ;;  %532 = vrot.lane.b32.xlu0 %v368_v31, %s1224_s11  ;;  %s895_s11 = scalar_lea.sflag [#allocation3], %s265_s26 }
  0x8f   : > { %v449_v28 = vpop.permute.xlu1 %448  ;;  %v425_v29 = vpop.permute.xlu0 %424 }
  0x90   : > { %v545_v34 = vsel %vm544_vm3, %v1324_v2, %v425_v29 }
  0x91   : > { %v554_v50 = vsel %vm553_vm4, %v545_v34, %v449_v28 }
  0x93   : > { %v451_v41 = vpop.permute.xlu1 %450  ;;  %v427_v43 = vpop.permute.xlu0 %426 }
  0x94   : > { %v546_v2 = vsel %vm544_vm3, %v1330_v10, %v427_v43 }
  0x95   : > { %v555_v59 = vsel %vm553_vm4, %v546_v2, %v451_v41 }
  0x97   : > { %v475_v44 = vpop.permute.xlu1 %474  ;;  %v473_v45 = vpop.permute.xlu0 %472 }
  0x98   : > { %v563_v52 = vsel %vm562_vm5, %v554_v50, %v473_v45  ;;  %v564_v60 = vsel %vm562_vm5, %v555_v59, %v475_v44 }
  0x9b   : > { %v429_v46 = vpop.permute.xlu1 %428  ;;  %v497_v48 = vpop.permute.xlu0 %496 }
  0x9c   : > { %v572_v53 = vsel %vm571_vm6, %v563_v52, %v497_v48  ;;  %v547_v12 = vsel %vm544_vm3, %v1342_v20, %v429_v46 }
  0x9f   : > { %v499_v49 = vpop.permute.xlu1 %498  ;;  %v433_v51 = vpop.permute.xlu0 %432 }
  0xa0   : > { %v573_v61 = vsel %vm571_vm6, %v564_v60, %v499_v49  ;;  %v549_v18 = vsel %vm544_vm3, %v1357_v26, %v433_v51 }
  0xa3   : > { %v431_v54 = vpop.permute.xlu1 %430  ;;  %v521_v55 = vpop.permute.xlu0 %520 }
  0xa4   : > { %v581_v56 = vsel %vm580_vm7, %v572_v53, %v521_v55  ;;  %v548_v30 = vsel %vm544_vm3, %v1379_v33, %v431_v54 }
  0xa5   : > { %1054 = vmatprep.mubr.msk.f32.mxu0 %vm600_vm8, %v581_v56 }
  0xa7   : > { %v453_v57 = vpop.permute.xlu1 %452  ;;  %v435_v58 = vpop.permute.xlu0 %434 }
  0xa8   : > { %v556_v13 = vsel %vm553_vm4, %v547_v12, %v453_v57  ;;  %v550_v39 = vsel %vm544_vm3, %v1410_v47, %v435_v58 }
  0xab   : > { %v523_v62 = vpop.permute.xlu1 %522  ;;  %v457_v63 = vpop.permute.xlu0 %456 }
  0xac   : > { %v582_v0 = vsel %vm580_vm7, %v573_v61, %v523_v62  ;;  %v558_v22 = vsel %vm553_vm4, %v549_v18, %v457_v63 }
  0xad   : > { %1055 = vmatmul.mubr.msk.f32.vlgmr.msra.gmra.mxu0 %vm600_vm8, %v582_v0 }
  0xaf   : > { %v459_v1 = vpop.permute.xlu1 %458  ;;  %v455_v3 = vpop.permute.xlu0 %454 }
  0xb0   : > { %v557_v32 = vsel %vm553_vm4, %v548_v30, %v455_v3  ;;  %v559_v36 = vsel %vm553_vm4, %v550_v39, %v459_v1 }
  0xb3   : > { %v481_v4 = vpop.permute.xlu1 %480  ;;  %v477_v5 = vpop.permute.xlu0 %476 }
  0xb4   : > { %v565_v14 = vsel %vm562_vm5, %v556_v13, %v477_v5  ;;  %v567_v23 = vsel %vm562_vm5, %v558_v22, %v481_v4 }
  0xb7   : > { %v483_v6 = vpop.permute.xlu1 %482  ;;  %v479_v10 = vpop.permute.xlu0 %478 }
  0xb8   : > { %v566_v26 = vsel %vm562_vm5, %v557_v32, %v479_v10  ;;  %v568_v33 = vsel %vm562_vm5, %v559_v36, %v483_v6 }
  0xbb   : > { %v505_v7 = vpop.permute.xlu1 %504  ;;  %v501_v8 = vpop.permute.xlu0 %500 }
  0xbc   : > { %v574_v15 = vsel %vm571_vm6, %v565_v14, %v501_v8  ;;  %v576_v20 = vsel %vm571_vm6, %v567_v23, %v505_v7 }
  0xbf   : > { %v503_v9 = vpop.permute.xlu1 %502  ;;  %v437_v11 = vpop.permute.xlu0 %436 }
  0xc0   : > { %v575_v35 = vsel %vm571_vm6, %v566_v26, %v503_v9  ;;  %v551_v46 = vsel %vm544_vm3, %v1471_v19, %v437_v11 }
  0xc3   : > { %v525_v16 = vpop.permute.xlu1 %524  ;;  %v507_v17 = vpop.permute.xlu0 %506 }
  0xc4   : > { %v583_v21 = vsel %vm580_vm7, %v574_v15, %v525_v16  ;;  %v577_v42 = vsel %vm571_vm6, %v568_v33, %v507_v17 }
  0xc5   : > { %1057 = vmatprep.mubr.msk.f32.mxu0 %vm600_vm8, %v583_v21 }
  0xc7   : > { %v439_v24 = vpop.permute.xlu1 %438  ;;  %v529_v27 = vpop.permute.xlu0 %528 }
  0xc8   : > { %v585_v31 = vsel %vm580_vm7, %v576_v20, %v529_v27  ;;  %v552_v48 = vsel %vm544_vm3, %v1483_v25, %v439_v24  ;;  %v1578_v25 = vld [vmem:[%s1759_s3] ss:$0 sm:$0xff] }
  0xc9   : > { %1060 = vmatprep.mubr.msk.f32.mxu1 %vm600_vm8, %v585_v31 }
  0xcb   : > { %v527_v37 = vpop.permute.xlu1 %526  ;;  %v461_v38 = vpop.permute.xlu0 %460 }
  0xcc   : > { %v584_v40 = vsel %vm580_vm7, %v575_v35, %v527_v37  ;;  %v560_v34 = vsel %vm553_vm4, %v551_v46, %v461_v38 }
  0xcd   : > { %1058 = vmatmul.mubr.msk.f32.gmra.mxu0 %vm600_vm8, %v584_v40 }
  0xcf   : > { %v463_v28 = vpop.permute.xlu1 %462  ;;  %v531_v29 = vpop.permute.xlu0 %530 }
  0xd0   : > { %v586_v41 = vsel %vm580_vm7, %v577_v42, %v531_v29  ;;  %v561_v49 = vsel %vm553_vm4, %v552_v48, %v463_v28 }
  0xd1   : > { %1061 = vmatmul.mubr.msk.f32.vlgmr.msra.gmra.mxu1 %vm600_vm8, %v586_v41 }
  0xd3   : > { %v487_v43 = vpop.permute.xlu1 %486  ;;  %v485_v44 = vpop.permute.xlu0 %484 }
  0xd4   : > { %v570_v51 = vsel %vm562_vm5, %v561_v49, %v487_v43  ;;  %v569_v50 = vsel %vm562_vm5, %v560_v34, %v485_v44 }
  0xd7   : > { %v511_v45 = vpop.permute.xlu1 %510  ;;  %v509_v47 = vpop.permute.xlu0 %508 }
  0xd8   : > { %v579_v52 = vsel %vm571_vm6, %v570_v51, %v511_v45  ;;  %v578_v53 = vsel %vm571_vm6, %v569_v50, %v509_v47 }
  0xdb   : > { %v535_v54 = vpop.permute.xlu1 %534  ;;  %v533_v55 = vpop.permute.xlu0 %532 }
  0xdc   : > { %v588_v56 = vsel %vm580_vm7, %v579_v52, %v535_v54  ;;  %v587_v19 = vsel %vm580_vm7, %v578_v53, %v533_v55 }
  0xdd   : > { %1063 = vmatprep.mubr.msk.f32.mxu1 %vm600_vm8, %v587_v19 }
  0xde   : > { %1064 = vmatmul.mubr.msk.f32.gmra.mxu1 %vm600_vm8, %v588_v56 }
 0x16d   : > { %v1056_v2 = vpop.f32.mrf.mxu0 }
 0x16e   : > { %v701_v57 = vadd.f32 %v1056_v2, %v1578_v25 }
 0x16f   : > { %v695_v58 = vpop.f32.mrf.mxu0 }
 0x170   : > { %v696_v59 = vadd.f32 %v1578_v25, %v695_v58  ;;  %v742_v60 = vrot.slane %v701_v57, 7  ;;  %v782_v7 = vrot.slane %v701_v57, 1  ;;  %v816_v8 = vrot.slane %v701_v57, 3 }
 0x171   : > { %v799_v14 = vrot.slane %v701_v57, 2  ;;  %v850_v15 = vrot.slane %v701_v57, 5  ;;  %v833_v21 = vrot.slane %v701_v57, 4  ;;  %v867_v22 = vrot.slane %v701_v57, 6 }
 0x172   : > { %v1583_v61 = vsel %vm743_vm9, %v742_v60, %v696_v59  ;;  %v781_v1 = vrot.slane %v696_v59, 2  ;;  %v764_v3 = vrot.slane %v696_v59, 1  ;;  %v815_v5 = vrot.slane %v696_v59, 4 }
 0x173   : > { %v798_v6 = vrot.slane %v696_v59, 3  ;;  %v849_v10 = vrot.slane %v696_v59, 6  ;;  %v832_v11 = vrot.slane %v696_v59, 5  ;;  %v866_v16 = vrot.slane %v696_v59, 7 }
 0x174   : > { %v783_v17 = vsel %vm743_vm9, %v782_v7, %v781_v1  ;;  %v765_v18 = vsel %vm743_vm9, %v701_v57, %v764_v3  ;;  %v817_v20 = vsel %vm743_vm9, %v816_v8, %v815_v5 }
 0x175   : > { %v800_v24 = vsel %vm743_vm9, %v799_v14, %v798_v6  ;;  %v851_v27 = vsel %vm743_vm9, %v850_v15, %v849_v10  ;;  %v834_v26 = vsel %vm743_vm9, %v833_v21, %v832_v11  ;;  %v1610_v39 = vsel %vm743_vm9, %v867_v22, %v866_v16 }
 0x18d   : > { %v1059_v62 = vpop.f32.mrf.mxu0 }
 0x18e   : > { %v1590_v12 = vadd.f32 %v1059_v62, %v1578_v25 }
 0x18f   : > { %v705_v63 = vpop.f32.mrf.mxu0 }
 0x190   : > { %v1586_v0 = vadd.f32 %v1578_v25, %v705_v63  ;;  %v785_v37 = vrot.slane %v1590_v12, 7  ;;  %v820_v38 = vrot.slane %v1590_v12, 1  ;;  %v768_v36 = vrot.slane %v1590_v12, 6 }
 0x191   : > { %v1062_v4 = vpop.f32.mrf.mxu1  ;;  %v854_v42 = vrot.slane %v1590_v12, 3  ;;  %v837_v41 = vrot.slane %v1590_v12, 2  ;;  %v871_v43 = vrot.slane %v1590_v12, 4  ;;  %v748_v51 = vrot.slane %v1590_v12, 5 }
 0x192   : > { %v818_v9 = vrot.slane %v1586_v0, 2  ;;  %v766_v23 = vrot.slane %v1586_v0, 7  ;;  %v801_v32 = vrot.slane %v1586_v0, 1  ;;  %v1605_v35 = vadd.f32 %v1062_v4, %v1578_v25 }
 0x193   : > { %v715_v13 = vpop.f32.mrf.mxu1  ;;  %v784_v40 = vsel %vm746_vm10, %v1586_v0, %v783_v17  ;;  %v852_v33 = vrot.slane %v1586_v0, 4  ;;  %v835_v49 = vrot.slane %v1586_v0, 3  ;;  %v745_v54 = vrot.slane %v1586_v0, 6 }
 0x194   : > { %v1599_v30 = vadd.f32 %v1578_v25, %v715_v13  ;;  %v819_v31 = vsel %vm746_vm10, %v818_v9, %v817_v20  ;;  %v767_v28 = vsel %vm746_vm10, %v766_v23, %v765_v18  ;;  %v802_v47 = vsel %vm746_vm10, %v801_v32, %v800_v24 }
 0x195   : > { %v821_v29 = vsel %vm749_vm11, %v820_v38, %v819_v31  ;;  %v786_v48 = vsel %vm749_vm11, %v785_v37, %v784_v40  ;;  %v823_v34 = vrot.slane %v1605_v35, 7  ;;  %v789_v50 = vrot.slane %v1605_v35, 5 }
 0x196   : > { %v787_v44 = vrot.slane %v1599_v30, 6  ;;  %v770_v45 = vrot.slane %v1599_v30, 5  ;;  %v804_v46 = vrot.slane %v1599_v30, 7  ;;  %v822_v52 = vsel %vm752_vm12, %v1599_v30, %v821_v29 }
 0x197   : > { %v853_v53 = vsel %vm746_vm10, %v852_v33, %v851_v27  ;;  %v769_v55 = vsel %vm749_vm11, %v768_v36, %v767_v28  ;;  %v772_v56 = vrot.slane %v1605_v35, 4  ;;  %v803_v19 = vsel %vm749_vm11, %v1590_v12, %v802_v47 }
 0x198   : > { %v751_v2 = vrot.slane %v1599_v30, 4  ;;  %v788_v58 = vsel %vm752_vm12, %v787_v44, %v786_v48  ;;  %v771_v59 = vsel %vm752_vm12, %v770_v45, %v769_v55  ;;  %v805_v60 = vsel %vm752_vm12, %v804_v46, %v803_v19 }
 0x199   : > { %v747_v62 = vsel %vm746_vm10, %v745_v54, %v1583_v61  ;;  %v824_v63 = vsel %vm755_vm13, %v823_v34, %v822_v52  ;;  %v806_v1 = vrot.slane %v1605_v35, 6  ;;  %v855_v3 = vsel %vm749_vm11, %v854_v42, %v853_v53 }
 0x19a   : > { %v750_v4 = vsel %vm749_vm11, %v748_v51, %v747_v62  ;;  %v856_v10 = vrot.slane %v1599_v30, 2  ;;  %v754_v8 = vrot.slane %v1605_v35, 3  ;;  %v790_v9 = vsel %vm755_vm13, %v789_v50, %v788_v58 }
 0x19b   : > { %v753_v7 = vsel %vm752_vm12, %v751_v2, %v750_v4  ;;  %v773_v11 = vsel %vm755_vm13, %v772_v56, %v771_v59  ;;  %v807_v13 = vsel %vm755_vm13, %v806_v1, %v805_v60  ;;  %v836_v14 = vsel %vm746_vm10, %v835_v49, %v834_v26 }
 0x19c   : > { %v839_v15 = vrot.slane %v1599_v30, 1  ;;  %v869_v16 = vrot.slane %v1586_v0, 5  ;;  %v756_v17 = vsel %vm755_vm13, %v754_v8, %v753_v7  ;;  %v857_v24 = vsel %vm752_vm12, %v856_v10, %v855_v3 }
 0x19d   : > { %v858_v27 = vrot.slane %v1605_v35, 1  ;;  %v838_v0 = vsel %vm749_vm11, %v837_v41, %v836_v14  ;;  %v873_v26 = vrot.slane %v1599_v30, 3  ;;  %v875_v54 = vrot.slane %v1605_v35, 2 }
 0x19e   : > { %v1065_v57 = vpop.f32.mrf.mxu1  ;;  %v840_v40 = vsel %vm752_vm12, %v839_v15, %v838_v0  ;;  %v870_v36 = vsel %vm746_vm10, %v869_v16, %v1610_v39 }
 0x19f   : > { %v1649_v5 = vadd.f32 %v1065_v57, %v1578_v25  ;;  %v859_v45 = vsel %vm755_vm13, %v858_v27, %v857_v24  ;;  %v841_v39 = vsel %vm755_vm13, %v1605_v35, %v840_v40  ;;  %v872_v47 = vsel %vm749_vm11, %v871_v43, %v870_v36 }
 0x1a0   : > { %v725_v6 = vpop.f32.mrf.mxu1  ;;  %v874_v43 = vsel %vm752_vm12, %v873_v26, %v872_v47 }
 0x1a1   : > { %v726_v61 = vadd.f32 %v1578_v25, %v725_v6  ;;  %v793_v25 = vrot.slane %v1649_v5, 3  ;;  %v776_v20 = vrot.slane %v1649_v5, 2  ;;  %v827_v30 = vrot.slane %v1649_v5, 5 }
 0x1a2   : > { %v810_v41 = vrot.slane %v1649_v5, 4  ;;  %v760_v44 = vrot.slane %v1649_v5, 1  ;;  %v861_v49 = vrot.slane %v1649_v5, 7  ;;  %v844_v53 = vrot.slane %v1649_v5, 6 }
 0x1a3   : > { %v791_v18 = vrot.slane %v726_v61, 4  ;;  %v774_v21 = vrot.slane %v726_v61, 3  ;;  %v825_v22 = vrot.slane %v726_v61, 6  ;;  %v808_v23 = vrot.slane %v726_v61, 5 }
 0x1a4   : > { %v842_v28 = vrot.slane %v726_v61, 7  ;;  %v757_v29 = vrot.slane %v726_v61, 2  ;;  %v860_v50 = vsel %vm758_vm14, %v726_v61, %v859_v45  ;;  %v877_v52 = vrot.slane %v726_v61, 1 }
 0x1a5   : > { %v792_v31 = vsel %vm758_vm14, %v791_v18, %v790_v9  ;;  %v775_v32 = vsel %vm758_vm14, %v774_v21, %v773_v11  ;;  %v826_v33 = vsel %vm758_vm14, %v825_v22, %v824_v63  ;;  %v809_v42 = vsel %vm758_vm14, %v808_v23, %v807_v13 }
 0x1a6   : > { %v794_v37 = vsel %vm761_vm15, %v793_v25, %v792_v31  ;;  %v777_v38 = vsel %vm761_vm15, %v776_v20, %v775_v32  ;;  %v759_v46 = vsel %vm758_vm14, %v757_v29, %v756_v17  ;;  %v828_v48 = vsel %vm761_vm15, %v827_v30, %v826_v33 }
 0x1a7   : > { %795 = vrot.lane.b32.xlu1 %v794_v37, %s1221_s9  ;;  %778 = vrot.lane.b32.xlu0 %v777_v38, %s1225_s22  ;;  %v811_v34 = vsel %vm761_vm15, %v810_v41, %v809_v42  ;;  %v762_v51 = vsel %vm761_vm15, %v760_v44, %v759_v46  ;;  %s1226_s9 = smov 16   ;;  %v843_v12 = vsel %vm758_vm14, %v842_v28, %v841_v39 }
 0x1a8   : > { %v862_v55 = vsel %vm761_vm15, %v861_v49, %v860_v50  ;;  %v845_v56 = vsel %vm761_vm15, %v844_v53, %v843_v12  ;;  %v876_v19 = vsel %vm755_vm13, %v875_v54, %v874_v43 }
 0x1a9   : > { %v878_v2 = vsel %vm758_vm14, %v877_v52, %v876_v19 }
 0x1aa   : > { %v879_v57 = vsel %vm761_vm15, %v1649_v5, %v878_v2 }
 0x1ab   : > { %829 = vrot.lane.b32.xlu1 %v828_v48, %s1226_s9  ;;  %812 = vrot.lane.b32.xlu0 %v811_v34, %s1220_s8  ;;  %s1227_s8 = smov 28  }
 0x1af   : > { %863 = vrot.lane.b32.xlu1 %v862_v55, %s1223_s24  ;;  %846 = vrot.lane.b32.xlu0 %v845_v56, %s1222_s14  ;;  %s1026_s14 = sshll.u32 %s1210_s18, 7  ;;  %s267_s24 = scalar_lea.vmem [#allocation2], %s1012_s29 }
 0x1b0   : > { %s909_s30 = sshll.u32 %s267_s24, 4  ;;  %s1715_s10 = scalar_lea.hbm %s1760_s4, %s1026_s14  ;;  %s910_s30 = int_to_ptr.vmem [resolvable:$true] %s909_s30 }
 0x1b1   : > { %s1142_s12 = scalar_lea.vmem %s910_s30, 128  ;;  %s1228_s18 = smov [#allocation2]  }
 0x1b2   : > { %p1143_p12 = scmp.ne.s32.totalorder %s910_s30, %s1142_s12  ;;  %s1146_s13 = sshll.u32 %s1228_s18, 4  ;;  %s1147_s13 = int_to_ptr.vmem [resolvable:$false] %s1146_s13 }
 0x1b3   : > { %880 = vrot.lane.b32.xlu0 %v879_v57, %s1227_s8  ;;  %s1148_s7 = scalar_lea.vmem %s1147_s13, 256  ;;  %p1149_p1 = scmp.lt.s32.totalorder %s910_s30, %s1147_s13 }
 0x1b4   : > { %p1144_p13 = pnand %p1143_p12, %p1294_p4  ;;  %p1150_p2 = scmp.lt.s32.totalorder %s1148_s7, %s1142_s12 }
 0x1b6   : > { %p1145_p0 = pneg %p1144_p13  ;;  %p1151_p3 = por %p1150_p2, %p1149_p1 }
 0x1b8   : > { %p1152_p5 = pnand %p1151_p3, %p1145_p0 }
 0x219   : > { %v796_v35 = vpop.permute.xlu1 %795  ;;  %v779_v58 = vpop.permute.xlu0 %778 }
 0x21a   : > { %v884_v59 = vsel %vm883_vm0, %v762_v51, %v779_v58 }
 0x21b   : > { %v885_v63 = vsel %vm544_vm3, %v884_v59, %v796_v35 }
 0x21d   : > { %v830_v60 = vpop.permute.xlu1 %829  ;;  %v813_v62 = vpop.permute.xlu0 %812 }
 0x21e   : > { %v886_v1 = vsel %vm553_vm4, %v885_v63, %v813_v62 }
 0x21f   : > { %v888_v4 = vsel %vm887_vm1, %v886_v1, %v830_v60 }
 0x221   : > { %v847_v3 = vpop.permute.xlu0 %846  ;;  %v864_v5 = vpop.permute.xlu1 %863 }
 0x222   : > { %v889_v6 = vsel %vm562_vm5, %v888_v4, %v847_v3 }
 0x223   : > { %v890_v7 = vsel %vm571_vm6, %v889_v6, %v864_v5 }
 0x225   : > { %v881_v10 = vpop.permute.xlu0 %880 }
 0x226   : > { %v892_v8 = vsel %vm891_vm2, %v890_v7, %v881_v10 }
 0x227   : > { %893 = vst.msk [vmem:[%s267_s24] sm:$0xff] %vm580_vm7, %v892_v8 }
 0x228   : > { %1155 = shalt.err (!%p1152_p5)
}
 0x229   : > { %s1156_s21 = scalar_lea.hbm %s1715_s10, 128  ;;  %s1160_s8 = scalar_lea.hbm %s1760_s4, 256 }
 0x22a   : > { %p1157_p6 = scmp.ne.s32.totalorder %s1715_s10, %s1156_s21  ;;  %p1161_p10 = scmp.lt.s32.totalorder %s1715_s10, %s1760_s4 }
 0x22b   : > { %p1162_p11 = scmp.lt.s32.totalorder %s1160_s8, %s1156_s21 }
 0x22c   : > { %p1158_p7 = pnand %p1157_p6, %p1294_p4 }
 0x22d   : > { %p1163_p12 = por %p1162_p11, %p1161_p10 }
 0x22e   : > { %p1159_p9 = pneg %p1158_p7 }
 0x230   : > { %p1164_p13 = pnand %p1163_p12, %p1159_p9 }
 0x232   : > { %1167 = shalt.err (!%p1164_p13)
}
 0x233   : > { %1078 = dma.vmem_to_hbm [thread:$0]  (%p1294_p4), %s910_s30, 128, %s1715_s10, %s895_s11  }
 0x234 PF: > { %p1085_p0 = scmp.ge.s32.totalorder %s1218_s20, 2  ;;  %s921_s14 = sand.u32 1, %s1198_s15  }
 0x235   : > { %s922_s24 = scalar_lea.sflag [#allocation3], %s921_s14 }
 0x236   : > { %p1081_p1 = pnand %p1085_p0, %p1301_p8 }
 0x238   : > { %p1082_p2 = pneg %p1081_p1 }
 0x23a   : > { %1193 = dma.done.wait (%p1082_p2), %s922_s24, 128  }
 0x23b   : > { %1195 = vsyncadd (%p1082_p2), %s922_s24, 4294967168  ;;  %s17_s20 = sadd.s32 1, %s1218_s20   ;;  %s1763_s15 = smov %s1202_s16 }
 0x23c   : > { %p14_p3 = scmp.ge.s32.totalorder %s17_s20, 4   ;;  %s1764_s16 = smov %s1206_s17 }
 0x23d   : > { %s1765_s17 = smov %s1307_s28  ;;  %s1766_s18 = smov %s1214_s19 }
 0x23e   : > { %s1767_s19 = smov %s1769_s23  ;;  %16 = sbr.rel (!%p14_p3) target bundleno = 4 (0x4), region = 74 }
 0x243   :  { %927 = vsyncpa [#allocation3], 1 }
 0x244   :  { %929 = vsyncpa [#allocation3 + $0x1], 1 }

</bundles_post_ra>
